<compile_context>
chip_gen: v6e
topology: v6e:2x2x1
jax: 0.10.0
libtpu: 0.0.40
codegen_flags: <defaults>
</compile_context>

<pallas_src>
import math
import jax
import jax.numpy as jnp
from jax import lax
from jax.experimental import pallas as pl
from jax.experimental.pallas import tpu as pltpu  # noqa: F401  (kept for TPU backend)

# ------------------------- problem sizes (small demo) -------------------------
B, T, D = 2, 16, 64          # batch, sequence length, hidden_dim
BT = B * T                   # folded batch*seq rows
HEADS = 16                   # fixed by the module: MultiHeadAttention(hidden, 16)
DH = D // HEADS              # per-head dim (= 4)
CONV_LAYERS = 2
K = 3                        # conv kernel size, padding=1 ('same')
FF = 128                     # feed_forward_dim (small stand-in for 2048)
LN_EPS = 1e-5

MXU_DTYPE = jnp.bfloat16     # bf16 MXU operands, f32 accumulation

assert D % HEADS == 0
assert T & (T - 1) == 0 and DH & (DH - 1) == 0, "head/batch batching uses shifts"
_LOG2_T = T.bit_length() - 1
_LOG2_DH = DH.bit_length() - 1

# packed bias / LayerNorm-vector rows (single DMA); order must match wrapper
R_CB0, R_CB1, R_BQKV, R_BO, R_G1, R_BE1, R_B1, R_B2, R_G2, R_BE2 = range(10)
N_VROWS = 10
VEC_W = 3 * D                # widest packed row (fused QKV bias)


# =============================== kernel helpers ===============================

def _mm(a, w):
    """MXU matmul: bf16 operands, f32 accumulation."""
    return jnp.dot(a.astype(MXU_DTYPE), w.astype(MXU_DTYPE),
                   preferred_element_type=jnp.float32)


def _layer_norm(y, gamma, beta):
    mu = jnp.mean(y, axis=-1, keepdims=True)
    var = jnp.mean((y - mu) ** 2, axis=-1, keepdims=True)
    return (y - mu) * lax.rsqrt(var + LN_EPS) * gamma + beta


# ============================= fused encoder kernel ===========================

def _encoder_kernel(x_ref, cw_ref, wqkv_ref, wo_ref, w1_ref, w2_ref, vec_ref,
                    o_ref):
    """Whole encoder on the folded (B*T, D) slab in one invocation.

    x_ref:   (BT, D)  f32           cw_ref: (L*K, D, D) bf16
    wqkv_ref:(D, 3D)  bf16          wo_ref: (D, D) bf16
    w1_ref:  (D, FF)  bf16          w2_ref: (FF, D) bf16
    vec_ref: (N_VROWS, 3D) f32      o_ref:  (BT, D) f32
    """
    vec = vec_ref[...]                                        # (10, 3D) f32
    cb = (vec[R_CB0:R_CB0 + 1, 0:D], vec[R_CB1:R_CB1 + 1, 0:D])
    bqkv = vec[R_BQKV:R_BQKV + 1, :]                          # (1, 3D)
    bo = vec[R_BO:R_BO + 1, 0:D]
    g1 = vec[R_G1:R_G1 + 1, 0:D]
    be1 = vec[R_BE1:R_BE1 + 1, 0:D]
    b1 = vec[R_B1:R_B1 + 1, 0:FF]
    b2 = vec[R_B2:R_B2 + 1, 0:D]
    g2 = vec[R_G2:R_G2 + 1, 0:D]
    be2 = vec[R_BE2:R_BE2 + 1, 0:D]

    cur = x_ref[...]                                          # (BT, D) f32

    # ---------------- ConvEncoder: CONV_LAYERS x ('same' conv1d + ReLU) ------
    # 0/1 shift matrices: row i picks row i-1 / i+1 of the SAME batch block
    # (else 0) -> zero 'same' padding at batch boundaries comes for free.
    ri = lax.broadcasted_iota(jnp.int32, (BT, BT), 0)
    ci = lax.broadcasted_iota(jnp.int32, (BT, BT), 1)
    same_b = jnp.right_shift(ri, _LOG2_T) == jnp.right_shift(ci, _LOG2_T)
    sh_m1 = jnp.logical_and(ci == ri - 1, same_b).astype(jnp.float32)  # x[t-1]
    sh_p1 = jnp.logical_and(ci == ri + 1, same_b).astype(jnp.float32)  # x[t+1]

    for layer in range(CONV_LAYERS):                          # static unroll
        x_m1 = _mm(sh_m1, cur)                                # shifted views via MXU
        x_p1 = _mm(sh_p1, cur)
        acc = (_mm(x_m1, cw_ref[layer * K + 0])
               + _mm(cur, cw_ref[layer * K + 1])
               + _mm(x_p1, cw_ref[layer * K + 2]))
        cur = jnp.maximum(acc + cb[layer], 0.0)               # (BT, D)

    # ---------------- MultiHeadAttention + residual + LayerNorm --------------
    x_att = cur                                               # (BT, D)
    qkv = _mm(x_att, wqkv_ref[...]) + bqkv                    # fused QKV (BT, 3D)
    q = qkv[:, 0:D]
    k = qkv[:, D:2 * D]
    v = qkv[:, 2 * D:3 * D]

    # Block mask on K/V: row block h of the replicated K/V keeps only head h's
    # hidden dims, so the stacked head axis lands on LANES of the score matrix.
    row_head = jnp.right_shift(
        lax.broadcasted_iota(jnp.int32, (HEADS * T, D), 0), _LOG2_T)
    col_head = jnp.right_shift(
        lax.broadcasted_iota(jnp.int32, (HEADS * T, D), 1), _LOG2_DH)
    head_sel = (row_head == col_head).astype(jnp.float32)     # (H*T, D)
    sel_scale = head_sel * (1.0 / math.sqrt(DH))

    ctx_parts = []
    for b in range(B):                                        # static unroll (B=2)
        qb = q[b * T:(b + 1) * T, :]                          # (T, D)
        kb = k[b * T:(b + 1) * T, :]
        vb = v[b * T:(b + 1) * T, :]
        k_blk = jnp.concatenate([kb] * HEADS, axis=0) * sel_scale   # (H*T, D)
        v_blk = jnp.concatenate([vb] * HEADS, axis=0) * head_sel    # (H*T, D)

        # scores: one MXU op, lane-dense (T, H*T), contracting D
        s = lax.dot_general(qb.astype(MXU_DTYPE), k_blk.astype(MXU_DTYPE),
                            (((1,), (1,)), ((), ())),
                            preferred_element_type=jnp.float32)     # (T, H*T)
        # Per-head softmax.  Subtracting the row-global max is a per-head
        # constant, so the per-head softmax is mathematically unchanged.
        p = jnp.exp(s - jnp.max(s, axis=-1, keepdims=True))         # dense exp
        # Per-head denominators, already broadcast over each head's DH lanes,
        # via one small f32 matmul against the head-selector mask.
        denom = jnp.dot(p, head_sel, preferred_element_type=jnp.float32)  # (T, D)
        # Context for ALL heads in one 256-deep matmul; normalize afterwards.
        ctx_un = _mm(p, v_blk)                                        # (T, D)
        ctx_parts.append(ctx_un * pl.reciprocal(denom, approx=True))
    ctx = jnp.concatenate(ctx_parts, axis=0)                  # (BT, D)

    att = _mm(ctx, wo_ref[...]) + bo
    y1 = _layer_norm(att + x_att, g1, be1)                    # residual + LN (f32)

    # ---------------- PositionFeedforward + residual + LayerNorm -------------
    h1 = jnp.maximum(_mm(y1, w1_ref[...]) + b1, 0.0)
    y2 = _mm(h1, w2_ref[...]) + b2 + y1
    o_ref[...] = _layer_norm(y2, g2, be2)                     # single (BT, D) store


# ============================== Python wrapper ================================

def _pack_row(v):
    """Pad a (1, n) vector to the shared packed width VEC_W."""
    v = v.reshape(1, -1)
    return jnp.pad(v, ((0, 0), (0, VEC_W - v.shape[1])))


@jax.jit
def encoder_forward(x, params):
    # Pre-pack weights outside the kernel (XLA, once per jit call):
    #   conv weights stacked to (L*K, D, D), QKV fused to (D, 3D),
    #   matmul weights shipped as bf16 (half the weight DMA bytes),
    #   all small bias / LayerNorm vectors packed into ONE (10, 3D) array.
    a = params["attn"]
    f = params["ffn"]
    cw = jnp.concatenate([p["w"] for p in params["conv"]], axis=0).astype(MXU_DTYPE)
    wqkv = jnp.concatenate([a["wq"], a["wk"], a["wv"]], axis=1).astype(MXU_DTYPE)
    wo = a["wo"].astype(MXU_DTYPE)
    w1 = f["w1"].astype(MXU_DTYPE)
    w2 = f["w2"].astype(MXU_DTYPE)
    bqkv = jnp.concatenate([a["bq"], a["bk"], a["bv"]], axis=1)      # (1, 3D)
    vecs = jnp.concatenate(
        [_pack_row(p["b"]) for p in params["conv"]]
        + [_pack_row(bqkv), _pack_row(a["bo"]), _pack_row(a["gamma"]),
           _pack_row(a["beta"]), _pack_row(f["b1"]), _pack_row(f["b2"]),
           _pack_row(f["gamma"]), _pack_row(f["beta"])],
        axis=0)                                                      # (10, 3D) f32

    out = pl.pallas_call(
        _encoder_kernel,
        out_shape=jax.ShapeDtypeStruct((BT, D), jnp.float32),
    )(x.reshape(BT, D), cw, wqkv, wo, w1, w2, vecs)
    return out.reshape(B, T, D)


# ============================ deterministic params ============================

def init_params(key):
    std = 0.02
    keys = jax.random.split(key, 4 + CONV_LAYERS)
    conv = []
    for l in range(CONV_LAYERS):
        conv.append({
            "w": std * jax.random.normal(keys[l], (K, D, D), jnp.float32),
            "b": jnp.zeros((1, D), jnp.float32),
        })
    kq, kk, kv, ko = jax.random.split(keys[CONV_LAYERS], 4)
    attn = {
        "wq": std * jax.random.normal(kq, (D, D), jnp.float32),
        "wk": std * jax.random.normal(kk, (D, D), jnp.float32),
        "wv": std * jax.random.normal(kv, (D, D), jnp.float32),
        "wo": std * jax.random.normal(ko, (D, D), jnp.float32),
        "bq": jnp.zeros((1, D), jnp.float32), "bk": jnp.zeros((1, D), jnp.float32),
        "bv": jnp.zeros((1, D), jnp.float32), "bo": jnp.zeros((1, D), jnp.float32),
        "gamma": jnp.ones((1, D), jnp.float32), "beta": jnp.zeros((1, D), jnp.float32),
    }
    k1, k2 = jax.random.split(keys[CONV_LAYERS + 1], 2)
    ffn = {
        "w1": std * jax.random.normal(k1, (D, FF), jnp.float32),
        "b1": jnp.zeros((1, FF), jnp.float32),
        "w2": std * jax.random.normal(k2, (FF, D), jnp.float32),
        "b2": jnp.zeros((1, D), jnp.float32),
        "gamma": jnp.ones((1, D), jnp.float32), "beta": jnp.zeros((1, D), jnp.float32),
    }
    return {"conv": conv, "attn": attn, "ffn": ffn}


if __name__ == "__main__":
    root = jax.random.PRNGKey(0)
    kx, kp = jax.random.split(root)
    x = jax.random.normal(kx, (B, T, D), jnp.float32)   # layout: (batch, seq, hidden)
    params = init_params(kp)

    out = encoder_forward(x, params)
    out = jax.block_until_ready(out)
    assert out.shape == (B, T, D) and out.dtype == jnp.float32
    assert bool(jnp.all(jnp.isfinite(out)))
    print("KERNEL_OK")
</pallas_src>

<mosaic_0001>
module attributes {stable_mosaic.version = 11 : i64} {
  func.func @_encoder_kernel(%arg0: memref<32x64xf32, #tpu.memory_space<vmem>>, %arg1: memref<6x64x64xbf16, #tpu.memory_space<vmem>>, %arg2: memref<64x192xbf16, #tpu.memory_space<vmem>>, %arg3: memref<64x64xbf16, #tpu.memory_space<vmem>>, %arg4: memref<64x128xbf16, #tpu.memory_space<vmem>>, %arg5: memref<128x64xbf16, #tpu.memory_space<vmem>>, %arg6: memref<10x192xf32, #tpu.memory_space<vmem>>, %arg7: memref<32x64xf32, #tpu.memory_space<vmem>>) attributes {dimension_semantics = [], scalar_prefetch = 0 : i64, scratch_operands = 0 : i64, tpu.core_type = #tpu.core_type<tc>} {
    %c0 = arith.constant 0 : index
    %c0_0 = arith.constant 0 : index
    %0 = vector.load %arg6[%c0, %c0_0] : memref<10x192xf32, #tpu.memory_space<vmem>>, vector<10x192xf32>
    %1 = vector.extract_strided_slice %0 {offsets = [0, 0], sizes = [1, 64], strides = [1, 1]} : vector<10x192xf32> to vector<1x64xf32>
    %2 = vector.extract_strided_slice %0 {offsets = [1, 0], sizes = [1, 64], strides = [1, 1]} : vector<10x192xf32> to vector<1x64xf32>
    %3 = vector.extract_strided_slice %0 {offsets = [2, 0], sizes = [1, 192], strides = [1, 1]} : vector<10x192xf32> to vector<1x192xf32>
    %4 = vector.extract_strided_slice %0 {offsets = [3, 0], sizes = [1, 64], strides = [1, 1]} : vector<10x192xf32> to vector<1x64xf32>
    %5 = vector.extract_strided_slice %0 {offsets = [4, 0], sizes = [1, 64], strides = [1, 1]} : vector<10x192xf32> to vector<1x64xf32>
    %6 = vector.extract_strided_slice %0 {offsets = [5, 0], sizes = [1, 64], strides = [1, 1]} : vector<10x192xf32> to vector<1x64xf32>
    %7 = vector.extract_strided_slice %0 {offsets = [6, 0], sizes = [1, 128], strides = [1, 1]} : vector<10x192xf32> to vector<1x128xf32>
    %8 = vector.extract_strided_slice %0 {offsets = [7, 0], sizes = [1, 64], strides = [1, 1]} : vector<10x192xf32> to vector<1x64xf32>
    %9 = vector.extract_strided_slice %0 {offsets = [8, 0], sizes = [1, 64], strides = [1, 1]} : vector<10x192xf32> to vector<1x64xf32>
    %10 = vector.extract_strided_slice %0 {offsets = [9, 0], sizes = [1, 64], strides = [1, 1]} : vector<10x192xf32> to vector<1x64xf32>
    %c0_1 = arith.constant 0 : index
    %c0_2 = arith.constant 0 : index
    %11 = vector.load %arg0[%c0_1, %c0_2] : memref<32x64xf32, #tpu.memory_space<vmem>>, vector<32x64xf32>
    %12 = tpu.iota {dimensions = array<i32: 0>} : vector<32x32xi32>
    %13 = tpu.iota {dimensions = array<i32: 1>} : vector<32x32xi32>
    %c4_i32 = arith.constant 4 : i32
    %14 = vector.broadcast %c4_i32 : i32 to vector<32x32xi32>
    %15 = arith.shrsi %12, %14 : vector<32x32xi32>
    %c4_i32_3 = arith.constant 4 : i32
    %16 = vector.broadcast %c4_i32_3 : i32 to vector<32x32xi32>
    %17 = arith.shrsi %13, %16 : vector<32x32xi32>
    %18 = arith.cmpi eq, %15, %17 : vector<32x32xi32>
    %c1_i32 = arith.constant 1 : i32
    %19 = vector.broadcast %c1_i32 : i32 to vector<32x32xi32>
    %20 = arith.subi %12, %19 : vector<32x32xi32>
    %21 = arith.cmpi eq, %13, %20 : vector<32x32xi32>
    %22 = arith.andi %21, %18 : vector<32x32xi1>
    %23 = arith.extui %22 : vector<32x32xi1> to vector<32x32xi32>
    %24 = arith.sitofp %23 : vector<32x32xi32> to vector<32x32xf32>
    %c1_i32_4 = arith.constant 1 : i32
    %25 = vector.broadcast %c1_i32_4 : i32 to vector<32x32xi32>
    %26 = arith.addi %12, %25 : vector<32x32xi32>
    %27 = arith.cmpi eq, %13, %26 : vector<32x32xi32>
    %28 = arith.andi %27, %18 : vector<32x32xi1>
    %29 = arith.extui %28 : vector<32x32xi1> to vector<32x32xi32>
    %30 = arith.sitofp %29 : vector<32x32xi32> to vector<32x32xf32>
    %31 = arith.truncf %24 : vector<32x32xf32> to vector<32x32xbf16>
    %32 = arith.truncf %11 : vector<32x64xf32> to vector<32x64xbf16>
    %cst = arith.constant dense<0.000000e+00> : vector<32x64xf32>
    %33 = tpu.matmul %31, %32, %cst {dimension_numbers = #tpu.dot_dimension_numbers<[1], [0], [0], [1], [0, 0, 1, 1], [], []>} : vector<32x32xbf16>, vector<32x64xbf16>, vector<32x64xf32> -> vector<32x64xf32>
    %34 = arith.truncf %30 : vector<32x32xf32> to vector<32x32xbf16>
    %35 = arith.truncf %11 : vector<32x64xf32> to vector<32x64xbf16>
    %cst_5 = arith.constant dense<0.000000e+00> : vector<32x64xf32>
    %36 = tpu.matmul %34, %35, %cst_5 {dimension_numbers = #tpu.dot_dimension_numbers<[1], [0], [0], [1], [0, 0, 1, 1], [], []>} : vector<32x32xbf16>, vector<32x64xbf16>, vector<32x64xf32> -> vector<32x64xf32>
    %c0_6 = arith.constant 0 : index
    %c0_7 = arith.constant 0 : index
    %c0_8 = arith.constant 0 : index
    %37 = vector.load %arg1[%c0_6, %c0_7, %c0_8] : memref<6x64x64xbf16, #tpu.memory_space<vmem>>, vector<1x64x64xbf16>
    %38 = vector.shape_cast %37 : vector<1x64x64xbf16> to vector<64x64xbf16>
    %39 = arith.truncf %33 : vector<32x64xf32> to vector<32x64xbf16>
    %cst_9 = arith.constant dense<0.000000e+00> : vector<32x64xf32>
    %40 = tpu.matmul %39, %38, %cst_9 {dimension_numbers = #tpu.dot_dimension_numbers<[1], [0], [0], [1], [0, 0, 1, 1], [], []>} : vector<32x64xbf16>, vector<64x64xbf16>, vector<32x64xf32> -> vector<32x64xf32>
    %c1 = arith.constant 1 : index
    %c0_10 = arith.constant 0 : index
    %c0_11 = arith.constant 0 : index
    %41 = vector.load %arg1[%c1, %c0_10, %c0_11] : memref<6x64x64xbf16, #tpu.memory_space<vmem>>, vector<1x64x64xbf16>
    %42 = vector.shape_cast %41 : vector<1x64x64xbf16> to vector<64x64xbf16>
    %43 = arith.truncf %11 : vector<32x64xf32> to vector<32x64xbf16>
    %cst_12 = arith.constant dense<0.000000e+00> : vector<32x64xf32>
    %44 = tpu.matmul %43, %42, %cst_12 {dimension_numbers = #tpu.dot_dimension_numbers<[1], [0], [0], [1], [0, 0, 1, 1], [], []>} : vector<32x64xbf16>, vector<64x64xbf16>, vector<32x64xf32> -> vector<32x64xf32>
    %45 = arith.addf %40, %44 : vector<32x64xf32>
    %c2 = arith.constant 2 : index
    %c0_13 = arith.constant 0 : index
    %c0_14 = arith.constant 0 : index
    %46 = vector.load %arg1[%c2, %c0_13, %c0_14] : memref<6x64x64xbf16, #tpu.memory_space<vmem>>, vector<1x64x64xbf16>
    %47 = vector.shape_cast %46 : vector<1x64x64xbf16> to vector<64x64xbf16>
    %48 = arith.truncf %36 : vector<32x64xf32> to vector<32x64xbf16>
    %cst_15 = arith.constant dense<0.000000e+00> : vector<32x64xf32>
    %49 = tpu.matmul %48, %47, %cst_15 {dimension_numbers = #tpu.dot_dimension_numbers<[1], [0], [0], [1], [0, 0, 1, 1], [], []>} : vector<32x64xbf16>, vector<64x64xbf16>, vector<32x64xf32> -> vector<32x64xf32>
    %50 = arith.addf %45, %49 : vector<32x64xf32>
    %51 = vector.broadcast %1 : vector<1x64xf32> to vector<32x64xf32>
    %52 = arith.addf %50, %51 : vector<32x64xf32>
    %cst_16 = arith.constant 0.000000e+00 : f32
    %53 = vector.broadcast %cst_16 : f32 to vector<32x64xf32>
    %54 = arith.maximumf %52, %53 : vector<32x64xf32>
    %55 = arith.truncf %24 : vector<32x32xf32> to vector<32x32xbf16>
    %56 = arith.truncf %54 : vector<32x64xf32> to vector<32x64xbf16>
    %cst_17 = arith.constant dense<0.000000e+00> : vector<32x64xf32>
    %57 = tpu.matmul %55, %56, %cst_17 {dimension_numbers = #tpu.dot_dimension_numbers<[1], [0], [0], [1], [0, 0, 1, 1], [], []>} : vector<32x32xbf16>, vector<32x64xbf16>, vector<32x64xf32> -> vector<32x64xf32>
    %58 = arith.truncf %30 : vector<32x32xf32> to vector<32x32xbf16>
    %59 = arith.truncf %54 : vector<32x64xf32> to vector<32x64xbf16>
    %cst_18 = arith.constant dense<0.000000e+00> : vector<32x64xf32>
    %60 = tpu.matmul %58, %59, %cst_18 {dimension_numbers = #tpu.dot_dimension_numbers<[1], [0], [0], [1], [0, 0, 1, 1], [], []>} : vector<32x32xbf16>, vector<32x64xbf16>, vector<32x64xf32> -> vector<32x64xf32>
    %c3 = arith.constant 3 : index
    %c0_19 = arith.constant 0 : index
    %c0_20 = arith.constant 0 : index
    %61 = vector.load %arg1[%c3, %c0_19, %c0_20] : memref<6x64x64xbf16, #tpu.memory_space<vmem>>, vector<1x64x64xbf16>
    %62 = vector.shape_cast %61 : vector<1x64x64xbf16> to vector<64x64xbf16>
    %63 = arith.truncf %57 : vector<32x64xf32> to vector<32x64xbf16>
    %cst_21 = arith.constant dense<0.000000e+00> : vector<32x64xf32>
    %64 = tpu.matmul %63, %62, %cst_21 {dimension_numbers = #tpu.dot_dimension_numbers<[1], [0], [0], [1], [0, 0, 1, 1], [], []>} : vector<32x64xbf16>, vector<64x64xbf16>, vector<32x64xf32> -> vector<32x64xf32>
    %c4 = arith.constant 4 : index
    %c0_22 = arith.constant 0 : index
    %c0_23 = arith.constant 0 : index
    %65 = vector.load %arg1[%c4, %c0_22, %c0_23] : memref<6x64x64xbf16, #tpu.memory_space<vmem>>, vector<1x64x64xbf16>
    %66 = vector.shape_cast %65 : vector<1x64x64xbf16> to vector<64x64xbf16>
    %67 = arith.truncf %54 : vector<32x64xf32> to vector<32x64xbf16>
    %cst_24 = arith.constant dense<0.000000e+00> : vector<32x64xf32>
    %68 = tpu.matmul %67, %66, %cst_24 {dimension_numbers = #tpu.dot_dimension_numbers<[1], [0], [0], [1], [0, 0, 1, 1], [], []>} : vector<32x64xbf16>, vector<64x64xbf16>, vector<32x64xf32> -> vector<32x64xf32>
    %69 = arith.addf %64, %68 : vector<32x64xf32>
    %c5 = arith.constant 5 : index
    %c0_25 = arith.constant 0 : index
    %c0_26 = arith.constant 0 : index
    %70 = vector.load %arg1[%c5, %c0_25, %c0_26] : memref<6x64x64xbf16, #tpu.memory_space<vmem>>, vector<1x64x64xbf16>
    %71 = vector.shape_cast %70 : vector<1x64x64xbf16> to vector<64x64xbf16>
    %72 = arith.truncf %60 : vector<32x64xf32> to vector<32x64xbf16>
    %cst_27 = arith.constant dense<0.000000e+00> : vector<32x64xf32>
    %73 = tpu.matmul %72, %71, %cst_27 {dimension_numbers = #tpu.dot_dimension_numbers<[1], [0], [0], [1], [0, 0, 1, 1], [], []>} : vector<32x64xbf16>, vector<64x64xbf16>, vector<32x64xf32> -> vector<32x64xf32>
    %74 = arith.addf %69, %73 : vector<32x64xf32>
    %75 = vector.broadcast %2 : vector<1x64xf32> to vector<32x64xf32>
    %76 = arith.addf %74, %75 : vector<32x64xf32>
    %cst_28 = arith.constant 0.000000e+00 : f32
    %77 = vector.broadcast %cst_28 : f32 to vector<32x64xf32>
    %78 = arith.maximumf %76, %77 : vector<32x64xf32>
    %c0_29 = arith.constant 0 : index
    %c0_30 = arith.constant 0 : index
    %79 = vector.load %arg2[%c0_29, %c0_30] : memref<64x192xbf16, #tpu.memory_space<vmem>>, vector<64x192xbf16>
    %80 = arith.truncf %78 : vector<32x64xf32> to vector<32x64xbf16>
    %cst_31 = arith.constant dense<0.000000e+00> : vector<32x192xf32>
    %81 = tpu.matmul %80, %79, %cst_31 {dimension_numbers = #tpu.dot_dimension_numbers<[1], [0], [0], [1], [0, 0, 1, 1], [], []>} : vector<32x64xbf16>, vector<64x192xbf16>, vector<32x192xf32> -> vector<32x192xf32>
    %82 = vector.broadcast %3 : vector<1x192xf32> to vector<32x192xf32>
    %83 = arith.addf %81, %82 : vector<32x192xf32>
    %84 = vector.extract_strided_slice %83 {offsets = [0, 0], sizes = [32, 64], strides = [1, 1]} : vector<32x192xf32> to vector<32x64xf32>
    %85 = vector.extract_strided_slice %83 {offsets = [0, 64], sizes = [32, 64], strides = [1, 1]} : vector<32x192xf32> to vector<32x64xf32>
    %86 = vector.extract_strided_slice %83 {offsets = [0, 128], sizes = [32, 64], strides = [1, 1]} : vector<32x192xf32> to vector<32x64xf32>
    %87 = tpu.iota {dimensions = array<i32: 0>} : vector<256x64xi32>
    %c4_i32_32 = arith.constant 4 : i32
    %88 = vector.broadcast %c4_i32_32 : i32 to vector<256x64xi32>
    %89 = arith.shrsi %87, %88 : vector<256x64xi32>
    %90 = tpu.iota {dimensions = array<i32: 1>} : vector<256x64xi32>
    %c2_i32 = arith.constant 2 : i32
    %91 = vector.broadcast %c2_i32 : i32 to vector<256x64xi32>
    %92 = arith.shrsi %90, %91 : vector<256x64xi32>
    %93 = arith.cmpi eq, %89, %92 : vector<256x64xi32>
    %94 = arith.extui %93 : vector<256x64xi1> to vector<256x64xi32>
    %95 = arith.sitofp %94 : vector<256x64xi32> to vector<256x64xf32>
    %cst_33 = arith.constant 5.000000e-01 : f32
    %96 = vector.broadcast %cst_33 : f32 to vector<256x64xf32>
    %97 = arith.mulf %95, %96 : vector<256x64xf32>
    %98 = vector.extract_strided_slice %84 {offsets = [0, 0], sizes = [16, 64], strides = [1, 1]} : vector<32x64xf32> to vector<16x64xf32>
    %99 = vector.extract_strided_slice %85 {offsets = [0, 0], sizes = [16, 64], strides = [1, 1]} : vector<32x64xf32> to vector<16x64xf32>
    %100 = vector.extract_strided_slice %86 {offsets = [0, 0], sizes = [16, 64], strides = [1, 1]} : vector<32x64xf32> to vector<16x64xf32>
    %101 = tpu.concatenate %99, %99, %99, %99, %99, %99, %99, %99, %99, %99, %99, %99, %99, %99, %99, %99 in 0 : vector<16x64xf32>, vector<16x64xf32>, vector<16x64xf32>, vector<16x64xf32>, vector<16x64xf32>, vector<16x64xf32>, vector<16x64xf32>, vector<16x64xf32>, vector<16x64xf32>, vector<16x64xf32>, vector<16x64xf32>, vector<16x64xf32>, vector<16x64xf32>, vector<16x64xf32>, vector<16x64xf32>, vector<16x64xf32> -> vector<256x64xf32>
    %102 = arith.mulf %101, %97 : vector<256x64xf32>
    %103 = tpu.concatenate %100, %100, %100, %100, %100, %100, %100, %100, %100, %100, %100, %100, %100, %100, %100, %100 in 0 : vector<16x64xf32>, vector<16x64xf32>, vector<16x64xf32>, vector<16x64xf32>, vector<16x64xf32>, vector<16x64xf32>, vector<16x64xf32>, vector<16x64xf32>, vector<16x64xf32>, vector<16x64xf32>, vector<16x64xf32>, vector<16x64xf32>, vector<16x64xf32>, vector<16x64xf32>, vector<16x64xf32>, vector<16x64xf32> -> vector<256x64xf32>
    %104 = arith.mulf %103, %95 : vector<256x64xf32>
    %105 = arith.truncf %98 : vector<16x64xf32> to vector<16x64xbf16>
    %106 = arith.truncf %102 : vector<256x64xf32> to vector<256x64xbf16>
    %cst_34 = arith.constant dense<0.000000e+00> : vector<16x256xf32>
    %107 = tpu.matmul %105, %106, %cst_34 {dimension_numbers = #tpu.dot_dimension_numbers<[1], [1], [0], [0], [0, 0, 1, 0], [], []>} : vector<16x64xbf16>, vector<256x64xbf16>, vector<16x256xf32> -> vector<16x256xf32>
    %cst_35 = arith.constant dense<0xFF800000> : vector<16xf32>
    %108 = vector.multi_reduction <maximumf>, %107, %cst_35 [1] : vector<16x256xf32> to vector<16xf32>
    %109 = vector.shape_cast %108 : vector<16xf32> to vector<16x1xf32>
    %110 = vector.broadcast %109 : vector<16x1xf32> to vector<16x256xf32>
    %111 = arith.subf %107, %110 : vector<16x256xf32>
    %112 = math.exp %111 : vector<16x256xf32>
    %cst_36 = arith.constant dense<0.000000e+00> : vector<16x64xf32>
    %113 = tpu.matmul %112, %95, %cst_36 {dimension_numbers = #tpu.dot_dimension_numbers<[1], [0], [0], [1], [0, 0, 1, 1], [], []>} : vector<16x256xf32>, vector<256x64xf32>, vector<16x64xf32> -> vector<16x64xf32>
    %114 = arith.truncf %112 : vector<16x256xf32> to vector<16x256xbf16>
    %115 = arith.truncf %104 : vector<256x64xf32> to vector<256x64xbf16>
    %cst_37 = arith.constant dense<0.000000e+00> : vector<16x64xf32>
    %116 = tpu.matmul %114, %115, %cst_37 {dimension_numbers = #tpu.dot_dimension_numbers<[1], [0], [0], [1], [0, 0, 1, 1], [], []>} : vector<16x256xbf16>, vector<256x64xbf16>, vector<16x64xf32> -> vector<16x64xf32>
    %117 = tpu.reciprocal %113 {approx = true} : vector<16x64xf32> -> vector<16x64xf32>
    %118 = arith.mulf %116, %117 : vector<16x64xf32>
    %119 = vector.extract_strided_slice %84 {offsets = [16, 0], sizes = [16, 64], strides = [1, 1]} : vector<32x64xf32> to vector<16x64xf32>
    %120 = vector.extract_strided_slice %85 {offsets = [16, 0], sizes = [16, 64], strides = [1, 1]} : vector<32x64xf32> to vector<16x64xf32>
    %121 = vector.extract_strided_slice %86 {offsets = [16, 0], sizes = [16, 64], strides = [1, 1]} : vector<32x64xf32> to vector<16x64xf32>
    %122 = tpu.concatenate %120, %120, %120, %120, %120, %120, %120, %120, %120, %120, %120, %120, %120, %120, %120, %120 in 0 : vector<16x64xf32>, vector<16x64xf32>, vector<16x64xf32>, vector<16x64xf32>, vector<16x64xf32>, vector<16x64xf32>, vector<16x64xf32>, vector<16x64xf32>, vector<16x64xf32>, vector<16x64xf32>, vector<16x64xf32>, vector<16x64xf32>, vector<16x64xf32>, vector<16x64xf32>, vector<16x64xf32>, vector<16x64xf32> -> vector<256x64xf32>
    %123 = arith.mulf %122, %97 : vector<256x64xf32>
    %124 = tpu.concatenate %121, %121, %121, %121, %121, %121, %121, %121, %121, %121, %121, %121, %121, %121, %121, %121 in 0 : vector<16x64xf32>, vector<16x64xf32>, vector<16x64xf32>, vector<16x64xf32>, vector<16x64xf32>, vector<16x64xf32>, vector<16x64xf32>, vector<16x64xf32>, vector<16x64xf32>, vector<16x64xf32>, vector<16x64xf32>, vector<16x64xf32>, vector<16x64xf32>, vector<16x64xf32>, vector<16x64xf32>, vector<16x64xf32> -> vector<256x64xf32>
    %125 = arith.mulf %124, %95 : vector<256x64xf32>
    %126 = arith.truncf %119 : vector<16x64xf32> to vector<16x64xbf16>
    %127 = arith.truncf %123 : vector<256x64xf32> to vector<256x64xbf16>
    %cst_38 = arith.constant dense<0.000000e+00> : vector<16x256xf32>
    %128 = tpu.matmul %126, %127, %cst_38 {dimension_numbers = #tpu.dot_dimension_numbers<[1], [1], [0], [0], [0, 0, 1, 0], [], []>} : vector<16x64xbf16>, vector<256x64xbf16>, vector<16x256xf32> -> vector<16x256xf32>
    %cst_39 = arith.constant dense<0xFF800000> : vector<16xf32>
    %129 = vector.multi_reduction <maximumf>, %128, %cst_39 [1] : vector<16x256xf32> to vector<16xf32>
    %130 = vector.shape_cast %129 : vector<16xf32> to vector<16x1xf32>
    %131 = vector.broadcast %130 : vector<16x1xf32> to vector<16x256xf32>
    %132 = arith.subf %128, %131 : vector<16x256xf32>
    %133 = math.exp %132 : vector<16x256xf32>
    %cst_40 = arith.constant dense<0.000000e+00> : vector<16x64xf32>
    %134 = tpu.matmul %133, %95, %cst_40 {dimension_numbers = #tpu.dot_dimension_numbers<[1], [0], [0], [1], [0, 0, 1, 1], [], []>} : vector<16x256xf32>, vector<256x64xf32>, vector<16x64xf32> -> vector<16x64xf32>
    %135 = arith.truncf %133 : vector<16x256xf32> to vector<16x256xbf16>
    %136 = arith.truncf %125 : vector<256x64xf32> to vector<256x64xbf16>
    %cst_41 = arith.constant dense<0.000000e+00> : vector<16x64xf32>
    %137 = tpu.matmul %135, %136, %cst_41 {dimension_numbers = #tpu.dot_dimension_numbers<[1], [0], [0], [1], [0, 0, 1, 1], [], []>} : vector<16x256xbf16>, vector<256x64xbf16>, vector<16x64xf32> -> vector<16x64xf32>
    %138 = tpu.reciprocal %134 {approx = true} : vector<16x64xf32> -> vector<16x64xf32>
    %139 = arith.mulf %137, %138 : vector<16x64xf32>
    %140 = tpu.concatenate %118, %139 in 0 : vector<16x64xf32>, vector<16x64xf32> -> vector<32x64xf32>
    %c0_42 = arith.constant 0 : index
    %c0_43 = arith.constant 0 : index
    %141 = vector.load %arg3[%c0_42, %c0_43] : memref<64x64xbf16, #tpu.memory_space<vmem>>, vector<64x64xbf16>
    %142 = arith.truncf %140 : vector<32x64xf32> to vector<32x64xbf16>
    %cst_44 = arith.constant dense<0.000000e+00> : vector<32x64xf32>
    %143 = tpu.matmul %142, %141, %cst_44 {dimension_numbers = #tpu.dot_dimension_numbers<[1], [0], [0], [1], [0, 0, 1, 1], [], []>} : vector<32x64xbf16>, vector<64x64xbf16>, vector<32x64xf32> -> vector<32x64xf32>
    %144 = vector.broadcast %4 : vector<1x64xf32> to vector<32x64xf32>
    %145 = arith.addf %143, %144 : vector<32x64xf32>
    %146 = arith.addf %145, %78 : vector<32x64xf32>
    %cst_45 = arith.constant dense<0.000000e+00> : vector<32xf32>
    %147 = vector.multi_reduction <add>, %146, %cst_45 [1] : vector<32x64xf32> to vector<32xf32>
    %148 = vector.shape_cast %147 : vector<32xf32> to vector<32x1xf32>
    %cst_46 = arith.constant 6.400000e+01 : f32
    %149 = vector.broadcast %cst_46 : f32 to vector<32x1xf32>
    %150 = arith.divf %148, %149 : vector<32x1xf32>
    %151 = vector.broadcast %150 : vector<32x1xf32> to vector<32x64xf32>
    %152 = arith.subf %146, %151 : vector<32x64xf32>
    %153 = arith.mulf %152, %152 : vector<32x64xf32>
    %cst_47 = arith.constant dense<0.000000e+00> : vector<32xf32>
    %154 = vector.multi_reduction <add>, %153, %cst_47 [1] : vector<32x64xf32> to vector<32xf32>
    %155 = vector.shape_cast %154 : vector<32xf32> to vector<32x1xf32>
    %cst_48 = arith.constant 6.400000e+01 : f32
    %156 = vector.broadcast %cst_48 : f32 to vector<32x1xf32>
    %157 = arith.divf %155, %156 : vector<32x1xf32>
    %158 = vector.broadcast %150 : vector<32x1xf32> to vector<32x64xf32>
    %159 = arith.subf %146, %158 : vector<32x64xf32>
    %cst_49 = arith.constant 9.99999974E-6 : f32
    %160 = vector.broadcast %cst_49 : f32 to vector<32x1xf32>
    %161 = arith.addf %157, %160 : vector<32x1xf32>
    %162 = math.rsqrt %161 : vector<32x1xf32>
    %163 = vector.broadcast %162 : vector<32x1xf32> to vector<32x64xf32>
    %164 = arith.mulf %159, %163 : vector<32x64xf32>
    %165 = vector.broadcast %5 : vector<1x64xf32> to vector<32x64xf32>
    %166 = arith.mulf %164, %165 : vector<32x64xf32>
    %167 = vector.broadcast %6 : vector<1x64xf32> to vector<32x64xf32>
    %168 = arith.addf %166, %167 : vector<32x64xf32>
    %c0_50 = arith.constant 0 : index
    %c0_51 = arith.constant 0 : index
    %169 = vector.load %arg4[%c0_50, %c0_51] : memref<64x128xbf16, #tpu.memory_space<vmem>>, vector<64x128xbf16>
    %170 = arith.truncf %168 : vector<32x64xf32> to vector<32x64xbf16>
    %cst_52 = arith.constant dense<0.000000e+00> : vector<32x128xf32>
    %171 = tpu.matmul %170, %169, %cst_52 {dimension_numbers = #tpu.dot_dimension_numbers<[1], [0], [0], [1], [0, 0, 1, 1], [], []>} : vector<32x64xbf16>, vector<64x128xbf16>, vector<32x128xf32> -> vector<32x128xf32>
    %172 = vector.broadcast %7 : vector<1x128xf32> to vector<32x128xf32>
    %173 = arith.addf %171, %172 : vector<32x128xf32>
    %cst_53 = arith.constant 0.000000e+00 : f32
    %174 = vector.broadcast %cst_53 : f32 to vector<32x128xf32>
    %175 = arith.maximumf %173, %174 : vector<32x128xf32>
    %c0_54 = arith.constant 0 : index
    %c0_55 = arith.constant 0 : index
    %176 = vector.load %arg5[%c0_54, %c0_55] : memref<128x64xbf16, #tpu.memory_space<vmem>>, vector<128x64xbf16>
    %177 = arith.truncf %175 : vector<32x128xf32> to vector<32x128xbf16>
    %cst_56 = arith.constant dense<0.000000e+00> : vector<32x64xf32>
    %178 = tpu.matmul %177, %176, %cst_56 {dimension_numbers = #tpu.dot_dimension_numbers<[1], [0], [0], [1], [0, 0, 1, 1], [], []>} : vector<32x128xbf16>, vector<128x64xbf16>, vector<32x64xf32> -> vector<32x64xf32>
    %179 = vector.broadcast %8 : vector<1x64xf32> to vector<32x64xf32>
    %180 = arith.addf %178, %179 : vector<32x64xf32>
    %181 = arith.addf %180, %168 : vector<32x64xf32>
    %cst_57 = arith.constant dense<0.000000e+00> : vector<32xf32>
    %182 = vector.multi_reduction <add>, %181, %cst_57 [1] : vector<32x64xf32> to vector<32xf32>
    %183 = vector.shape_cast %182 : vector<32xf32> to vector<32x1xf32>
    %cst_58 = arith.constant 6.400000e+01 : f32
    %184 = vector.broadcast %cst_58 : f32 to vector<32x1xf32>
    %185 = arith.divf %183, %184 : vector<32x1xf32>
    %186 = vector.broadcast %185 : vector<32x1xf32> to vector<32x64xf32>
    %187 = arith.subf %181, %186 : vector<32x64xf32>
    %188 = arith.mulf %187, %187 : vector<32x64xf32>
    %cst_59 = arith.constant dense<0.000000e+00> : vector<32xf32>
    %189 = vector.multi_reduction <add>, %188, %cst_59 [1] : vector<32x64xf32> to vector<32xf32>
    %190 = vector.shape_cast %189 : vector<32xf32> to vector<32x1xf32>
    %cst_60 = arith.constant 6.400000e+01 : f32
    %191 = vector.broadcast %cst_60 : f32 to vector<32x1xf32>
    %192 = arith.divf %190, %191 : vector<32x1xf32>
    %193 = vector.broadcast %185 : vector<32x1xf32> to vector<32x64xf32>
    %194 = arith.subf %181, %193 : vector<32x64xf32>
    %cst_61 = arith.constant 9.99999974E-6 : f32
    %195 = vector.broadcast %cst_61 : f32 to vector<32x1xf32>
    %196 = arith.addf %192, %195 : vector<32x1xf32>
    %197 = math.rsqrt %196 : vector<32x1xf32>
    %198 = vector.broadcast %197 : vector<32x1xf32> to vector<32x64xf32>
    %199 = arith.mulf %194, %198 : vector<32x64xf32>
    %200 = vector.broadcast %9 : vector<1x64xf32> to vector<32x64xf32>
    %201 = arith.mulf %199, %200 : vector<32x64xf32>
    %202 = vector.broadcast %10 : vector<1x64xf32> to vector<32x64xf32>
    %203 = arith.addf %201, %202 : vector<32x64xf32>
    %c0_62 = arith.constant 0 : index
    %c0_63 = arith.constant 0 : index
    %204 = vector.load %arg7[%c0_62, %c0_63] : memref<32x64xf32, #tpu.memory_space<vmem>>, vector<32x64xf32>
    tpu.vector_store %arg7[%c0_62, %c0_63], %203 {strides = array<i32>} : memref<32x64xf32, #tpu.memory_space<vmem>>, vector<32x64xf32>,
    return
  }
}

</mosaic_0001>

<bundles_post_ra>
// kernel: encoder_forward.1
= control target key start
LH: loop header
LB: loop body
LE: loop exit
PB: predicated region body
PF: predicated region fallthrough
CT: control target
= control target key end

     0   :  { %v35_v3 = vlaneseq  ;;  %vm87_vm0 = vcmask 261120   ;;  %v5170_v22 = vmov 0.0   ;;  %s5135_s0 = inlined_call_operand.vmem [shape: f32[32,64], index: 0, kind: input, shape index: {}]   ;;  %s5136_s1 = inlined_call_operand.vmem [shape: bf16[6,64,64], index: 1, kind: input, shape index: {}]   ;;  %s5137_s2 = inlined_call_operand.vmem [shape: bf16[64,192], index: 2, kind: input, shape index: {}]   ;;  %s5138_s3 = inlined_call_operand.vmem [shape: bf16[64,64], index: 3, kind: input, shape index: {}]   ;;  %s5139_s4 = inlined_call_operand.vmem [shape: bf16[64,128], index: 4, kind: input, shape index: {}]   ;;  %s5140_s5 = inlined_call_operand.vmem [shape: bf16[128,64], index: 5, kind: input, shape index: {}]   ;;  %s5141_s6 = inlined_call_operand.vmem [shape: f32[10,192], index: 6, kind: input, shape index: {}]   ;;  %s5142_s7 = inlined_call_operand.hbm [shape: f32[32,64], index: 7, kind: output, shape index: {}]  }
   0x1   :  { %v33_v0 = vld [vmem:[%s5135_s0 + $0x10] sm:$0xff]  ;;  %v34_v1 = vld [vmem:[%s5135_s0 + $0x18] sm:$0xff]  ;;  %v31_v2 = vld [vmem:[%s5135_s0] sm:$0xff] }
   0x2   :  { %v3334_v4 = vpack.c.bf16 %v34_v1, %v33_v0  ;;  %v32_v5 = vld [vmem:[%s5135_s0 + $0x8] sm:$0xff]  ;;  %v3341_v7 = vshrl.u32 %v35_v3, 7  ;;  %v3343_v8 = vand.u32 127, %v35_v3  ;;  %v3163_v16 = vld [vmem:[%s5136_s1 + $0x38] sm:$0xff]   ;;  %v3170_v37 = vld [vmem:[%s5136_s1 + $0x50] sm:$0xff]  }
   0x3   :  { %v3339_v6 = vpack.c.bf16 %v32_v5, %v31_v2  ;;  %v3168_v28 = vld [vmem:[%s5136_s1 + $0x58] sm:$0xff]   ;;  %v3164_v41 = vld [vmem:[%s5136_s1 + $0x30] sm:$0xff]   ;;  %v3165_v44 = vld [vmem:[%s5136_s1 + $0x28] sm:$0xff]  }
   0x4   :  { %5327 = vst [vmem:[#allocation5_spill] sm:$0xff] %v3341_v7  ;;  %2992 = vmatprep.subr.bf16.mxu0 %v3334_v4  ;;  %3000 = vmatprep.subr.bf16.mxu1 %v3334_v4  ;;  %v3350_v9 = vadd.s32 8, %v3341_v7  ;;  %v5168_v10 = vshra.s32 %v3341_v7, 4  ;;  %v46_v11 = vshra.s32 %v3343_v8, 4  ;;  %v2538_v12 = vadd.s32 4294967295, %v3341_v7  ;;  %v3166_v45 = vld [vmem:[%s5136_s1 + $0x20] sm:$0xff]  }
   0x5   :  { %2993 = vmatpush3.bf16.msra.mxu0 %v3334_v4  ;;  %3001 = vmatpush3.bf16.msra.mxu1 %v3334_v4  ;;  %v63_v13 = vadd.s32 1, %v3341_v7  ;;  %v3359_v14 = vadd.s32 16, %v3341_v7  ;;  %v3362_v15 = vadd.s32 24, %v3341_v7  ;;  %v3167_v46 = vld [vmem:[%s5136_s1 + $0x18] sm:$0xff]   ;;  %v3169_v47 = vld [vmem:[%s5136_s1 + $0x10] sm:$0xff]  }
   0x6   :  { %2994 = vmatprep.subr.bf16.mxu0 %v3339_v6  ;;  %3002 = vmatprep.subr.bf16.mxu1 %v3339_v6  ;;  %v5163_v17 = vshra.s32 %v3350_v9, 4  ;;  %vm47_vm1 = vcmp.eq.s32.totalorder %v5168_v10, %v46_v11  ;;  %v2539_v18 = vadd.s32 4294967295, %v3350_v9  ;;  %vm55_vm2 = vcmp.eq.s32.totalorder %v3343_v8, %v2538_v12 }
   0x7   :  { %vm59_vm3 = vmand %vm55_vm2, %vm47_vm1  ;;  %v64_v19 = vadd.s32 1, %v3350_v9  ;;  %vm67_vm4 = vcmp.eq.s32.totalorder %v3343_v8, %v63_v13  ;;  %v44_v20 = vshra.s32 %v3359_v14, 4  ;;  %v45_v21 = vshra.s32 %v3362_v15, 4 }
   0x8   :  { %vm48_vm5 = vcmp.eq.s32.totalorder %v5163_v17, %v46_v11  ;;  %vm56_vm6 = vcmp.eq.s32.totalorder %v3343_v8, %v2539_v18  ;;  %v2542_v23 = vsel %vm59_vm3, 1.0, %v5170_v22  ;;  %vm71_vm7 = vmand %vm67_vm4, %vm47_vm1  ;;  %v2540_v24 = vadd.s32 4294967295, %v3359_v14 }
   0x9   :  { %2995 = vmatpush3.bf16.msra.mxu0 %v3339_v6  ;;  %3003 = vmatpush3.bf16.msra.mxu1 %v3339_v6  ;;  %vm60_vm8 = vmand %vm56_vm6, %vm48_vm5  ;;  %vm68_vm9 = vcmp.eq.s32.totalorder %v3343_v8, %v64_v19  ;;  %v2548_v25 = vsel %vm71_vm7, 1.0, %v5170_v22  ;;  %vm3387_vm10 = vcmp.eq.s32.totalorder %v44_v20, %v46_v11  ;;  %vm3393_vm11 = vcmp.eq.s32.totalorder %v45_v21, %v46_v11 }
   0xa   :  { %3008 = vmatprep.subr.bf16.mxu1 %v3163_v16  ;;  %v2543_v29 = vsel %vm60_vm8, 1.0, %v5170_v22  ;;  %vm72_vm12 = vmand %vm68_vm9, %vm48_vm5  ;;  %v2541_v30 = vadd.s32 4294967295, %v3362_v15  ;;  %vm57_vm13 = vcmp.eq.s32.totalorder %v3343_v8, %v2540_v24  ;;  %v65_v31 = vadd.s32 1, %v3359_v14  ;;  %3032 = vmatprep.subr.bf16.mxu0 %v3168_v28 }
   0xb   :  { %v3404_v32 = vpack.c.bf16 %v2543_v29, %v2542_v23  ;;  %v2549_v33 = vsel %vm72_vm12, 1.0, %v5170_v22  ;;  %vm61_vm14 = vmand %vm57_vm13, %vm3387_vm10  ;;  %v66_v34 = vadd.s32 1, %v3362_v15  ;;  %vm5143_vm6 = vcmask 523264  }
   0xc   :  { %v3410_v35 = vpack.c.bf16 %v2549_v33, %v2548_v25  ;;  %vm58_vm15 = vcmp.eq.s32.totalorder %v3343_v8, %v2541_v30  ;;  %v2544_v36 = vsel %vm61_vm14, 1.0, %v5170_v22  ;;  %vm69_vm1 = vcmp.eq.s32.totalorder %v3343_v8, %v65_v31 }
   0xd   :  { %2996 = vmatprep.mubr.msk.bf16.mxu0 %vm87_vm0, %v3404_v32  ;;  %vm62_vm2 = vmand %vm58_vm15, %vm3393_vm11  ;;  %vm70_vm3 = vcmp.eq.s32.totalorder %v3343_v8, %v66_v34 }
   0xe   :  { %3004 = vmatprep.mubr.msk.bf16.mxu1 %vm87_vm0, %v3410_v35  ;;  %v2545_v38 = vsel %vm62_vm2, 1.0, %v5170_v22  ;;  %vm73_vm4 = vmand %vm69_vm1, %vm3387_vm10 }
   0xf   :  { %v3428_v39 = vpack.c.bf16 %v2545_v38, %v2544_v36  ;;  %vm74_vm5 = vmand %vm70_vm3, %vm3393_vm11  ;;  %v2550_v40 = vsel %vm73_vm4, 1.0, %v5170_v22 }
  0x10   :  { %v2551_v42 = vsel %vm74_vm5, 1.0, %v5170_v22 }
  0x11   :  { %2997 = vmatmul.mubr.msk.bf16.vlgmr.msra.gmra.mxu0 %vm87_vm0, %v3428_v39  ;;  %v3439_v43 = vpack.c.bf16 %v2551_v42, %v2550_v40 }
  0x12   :  { %3033 = vmatpush3.bf16.msra.mxu0 %v3168_v28 }
  0x13   :  { %3005 = vmatmul.mubr.msk.bf16.vlgmr.msra.gmra.mxu1 %vm87_vm0, %v3439_v43  ;;  %3034 = vmatprep.subr.bf16.mxu0 %v3170_v37 }
  0x14   :  { %3009 = vmatpush3.bf16.msra.mxu1 %v3163_v16  ;;  %3016 = vmatprep.mubr.msk.bf16.mxu1 %vm5143_vm6, %v3339_v6 }
  0x15   :  { %3010 = vmatprep.subr.bf16.mxu1 %v3164_v41 }
  0x16   :  { %3035 = vmatpush3.bf16.msra.mxu0 %v3170_v37 }
  0x18   :  { %3011 = vmatpush3.bf16.msra.mxu1 %v3164_v41 }
  0x19   :  { %3012 = vmatprep.subr.bf16.mxu1 %v3165_v44 }
  0x1c   :  { %3013 = vmatpush3.bf16.msra.mxu1 %v3165_v44 }
  0x1d   :  { %3014 = vmatprep.subr.bf16.mxu1 %v3166_v45 }
  0x20   :  { %3015 = vmatpush3.bf16.msra.mxu1 %v3166_v45 }
  0x21   :  { %3020 = vmatprep.subr.bf16.mxu1 %v3167_v46 }
  0x23   :  { %3017 = vmatmul.mubr.msk.bf16.vlgmr.msra.gmra.mxu1 %vm5143_vm6, %v3334_v4 }
  0x24   :  { %3021 = vmatpush3.bf16.msra.mxu1 %v3167_v46 }
  0x25   :  { %3022 = vmatprep.subr.bf16.mxu1 %v3169_v47 }
  0x26   :  { %12 = vsyncpa [#allocation3], 0  ;;  %v3171_v48 = vld [vmem:[%s5136_s1 + $0x8] sm:$0xff]   ;;  %v3173_v50 = vld [vmem:[%s5136_s1] sm:$0xff]   ;;  %v5155_v12 = vsub.s32 0, %v3341_v7 }
  0x27   :  { %v3172_v49 = vld [vmem:[%s5136_s1 + $0x48] sm:$0xff]   ;;  %v3174_v51 = vld [vmem:[%s5136_s1 + $0x40] sm:$0xff]   ;;  %v3175_v0 = vld [vmem:[%s5136_s1 + $0x98] sm:$0xff]  }
  0x28   :  { %3023 = vmatpush3.bf16.msra.mxu1 %v3169_v47  ;;  %3036 = vmatprep.subr.bf16.mxu0 %v3172_v49  ;;  %v3176_v1 = vld [vmem:[%s5136_s1 + $0x90] sm:$0xff]   ;;  %v3177_v2 = vld [vmem:[%s5136_s1 + $0x88] sm:$0xff]   ;;  %v3178_v3 = vld [vmem:[%s5136_s1 + $0x80] sm:$0xff]  }
  0x29   :  { %3024 = vmatprep.subr.bf16.mxu1 %v3171_v48  ;;  %3037 = vmatpush3.bf16.msra.mxu0 %v3172_v49  ;;  %v3493_v16 = vld [vmem:[%s5141_s6] sm:$0xff] }
  0x2a   :  { %3038 = vmatprep.subr.bf16.mxu0 %v3174_v51  ;;  %v483_v25 = vrot.slane %v3493_v16, %v5155_v12 }
  0x2c   :  { %3025 = vmatpush3.bf16.msra.mxu1 %v3171_v48 }
  0x2d   :  { %3026 = vmatprep.subr.bf16.mxu1 %v3173_v50  ;;  %3039 = vmatpush3.bf16.msra.mxu0 %v3174_v51  ;;  %v3180_v51 = vld [vmem:[%s5136_s1 + $0x70] sm:$0xff]  }
  0x2e   :  { %3060 = vmatprep.subr.bf16.mxu0 %v3175_v0 }
  0x30   :  { %3027 = vmatpush3.bf16.msra.mxu1 %v3173_v50  ;;  %v3179_v50 = vld [vmem:[%s5136_s1 + $0x78] sm:$0xff]  }
  0xd1   :  { %v2998_v52 = vpop.f32.mrf.mxu0 }
  0xd3   :  { %v3006_v53 = vpop.f32.mrf.mxu1  ;;  %v128_v54 = vpop.f32.mrf.mxu0 }
  0xd5   :  { %v193_v55 = vpop.f32.mrf.mxu1  ;;  %v2999_v56 = vpop.f32.mrf.mxu0 }
  0xd6   :  { %v217_v60 = vpack.c.bf16 %v2999_v56, %v2998_v52  ;;  %v3184_v52 = vld [vmem:[%s5136_s1 + $0xb0] sm:$0xff]  }
  0xd7   :  { %v3007_v57 = vpop.f32.mrf.mxu1  ;;  %v131_v58 = vpop.f32.mrf.mxu0 }
  0xd8   :  { %v216_v59 = vpack.c.bf16 %v131_v58, %v128_v54  ;;  %v396_v63 = vpack.c.bf16 %v3007_v57, %v3006_v53  ;;  %v3185_v53 = vld [vmem:[%s5136_s1 + $0xa8] sm:$0xff]   ;;  %v3186_v54 = vld [vmem:[%s5136_s1 + $0xa0] sm:$0xff]  }
  0xd9   :  { %v196_v61 = vpop.f32.mrf.mxu1 }
  0xda   :  { %v395_v62 = vpack.c.bf16 %v196_v61, %v193_v55  ;;  %3028 = vmatprep.mubr.msk.bf16.mxu1 %vm5143_vm6, %v216_v59 }
  0xdb   :  { %3029 = vmatmul.mubr.msk.bf16.vlgmr.msra.gmra.mxu1 %vm5143_vm6, %v217_v60 }
  0xdc   :  { %3040 = vmatprep.mubr.msk.bf16.mxu0 %vm5143_vm6, %v395_v62  ;;  %3048 = vmatprep.mubr.msk.bf16.mxu1 %vm87_vm0, %v3404_v32 }
  0xdd   :  { %3041 = vmatmul.mubr.msk.bf16.vlgmr.msra.gmra.mxu0 %vm5143_vm6, %v396_v63 }
  0xde   :  { %3061 = vmatpush3.bf16.msra.mxu0 %v3175_v0 }
  0xdf   :  { %3062 = vmatprep.subr.bf16.mxu0 %v3176_v1 }
  0xe2   :  { %3063 = vmatpush3.bf16.msra.mxu0 %v3176_v1 }
  0xe3   :  { %3064 = vmatprep.subr.bf16.mxu0 %v3177_v2  ;;  %v3018_v4 = vpop.f32.mrf.mxu1 }
  0xe5   :  { %v292_v5 = vpop.f32.mrf.mxu1 }
  0xe6   :  { %3065 = vmatpush3.bf16.msra.mxu0 %v3177_v2 }
  0xe7   :  { %3066 = vmatprep.subr.bf16.mxu0 %v3178_v3  ;;  %v3019_v6 = vpop.f32.mrf.mxu1 }
  0xe9   :  { %v295_v11 = vpop.f32.mrf.mxu1 }
  0xea   :  { %3067 = vmatpush3.bf16.msra.mxu0 %v3178_v3  ;;  %v3187_v3 = vld [vmem:[%s5137_s2 + $0x30] ss:$8 sps:$4 sm:$0xff]  }
 0x19b   :  { %v3030_v13 = vpop.f32.mrf.mxu1 }
 0x19c   :  { %v380_v18 = vadd.f32 %v3030_v13, %v3018_v4  ;;  %v3189_v4 = vld [vmem:[%s5137_s2 + $0x34] ss:$8 sps:$4 sm:$0xff]   ;;  %v3193_v13 = vld [vmem:[%s5137_s2 + $0x10] ss:$8 sps:$4 sm:$0xff]  }
 0x19d   :  { %v3042_v19 = vpop.f32.mrf.mxu0  ;;  %v371_v23 = vpop.f32.mrf.mxu1 }
 0x19e   :  { %v478_v24 = vadd.f32 %v3042_v19, %v380_v18  ;;  %v372_v26 = vadd.f32 %v371_v23, %v292_v5  ;;  %v3192_v5 = vld [vmem:[%s5137_s2 + $0x24] ss:$8 sps:$4 sm:$0xff]   ;;  %v3196_v19 = vld [vmem:[%s5137_s2] ss:$8 sps:$4 sm:$0xff]   ;;  %v5162_v23 = vmov 0  }
 0x19f   :  { %v461_v27 = vpop.f32.mrf.mxu0  ;;  %v3031_v28 = vpop.f32.mrf.mxu1  ;;  %v3198_v18 = vld [vmem:[%s5137_s2 + $0x4] ss:$8 sps:$4 sm:$0xff]  }
 0x1a0   :  { %v476_v29 = vadd.f32 %v461_v27, %v372_v26  ;;  %v383_v30 = vadd.f32 %v3031_v28, %v3019_v6  ;;  %v486_v33 = vadd.f32 %v483_v25, %v478_v24  ;;  %v3190_v6 = vld [vmem:[%s5137_s2 + $0x20] ss:$8 sps:$4 sm:$0xff]   ;;  %v3560_v24 = vshra.s32 %v3343_v8, 2 }
 0x1a1   :  { %v3043_v31 = vpop.f32.mrf.mxu0  ;;  %v374_v32 = vpop.f32.mrf.mxu1  ;;  %v1019_v26 = vadd.s32 240, %v3341_v7  ;;  %v1004_v27 = vadd.s32 120, %v3341_v7  ;;  %v1020_v28 = vadd.s32 248, %v3341_v7 }
 0x1a2   :  { %v479_v34 = vadd.f32 %v3043_v31, %v383_v30  ;;  %v375_v36 = vadd.f32 %v374_v32, %v295_v11  ;;  %v484_v38 = vadd.f32 %v483_v25, %v476_v29  ;;  %v490_v42 = vmax.f32 %v486_v33, 0.0  ;;  %v3195_v11 = vld [vmem:[%s5137_s2 + $0x14] ss:$8 sps:$4 sm:$0xff]   ;;  %s3280_s2 = smov 64  }
 0x1a3   :  { %v464_v37 = vpop.f32.mrf.mxu0  ;;  %v1001_v29 = vadd.s32 96, %v3341_v7  ;;  %v1002_v30 = vadd.s32 104, %v3341_v7  ;;  %v1017_v31 = vadd.s32 224, %v3341_v7  ;;  %v1018_v32 = vadd.s32 232, %v3341_v7 }
 0x1a4   :  { %v487_v40 = vadd.f32 %v483_v25, %v479_v34  ;;  %v477_v41 = vadd.f32 %v464_v37, %v375_v36  ;;  %v488_v46 = vmax.f32 %v484_v38, 0.0  ;;  %v1047_v34 = vshra.s32 %v1019_v26, 4 }
 0x1a5   :  { %v1032_v8 = vshra.s32 %v1004_v27, 4  ;;  %v1048_v36 = vshra.s32 %v1020_v28, 4  ;;  %v1029_v37 = vshra.s32 %v1001_v29, 4  ;;  %v1030_v38 = vshra.s32 %v1002_v30, 4 }
 0x1a6   :  { %v491_v44 = vmax.f32 %v487_v40, 0.0  ;;  %v485_v45 = vadd.f32 %v483_v25, %v477_v41  ;;  %v1003_v25 = vadd.s32 112, %v3341_v7  ;;  %v1045_v40 = vshra.s32 %v1017_v31, 4 }
 0x1a7   :  { %v1046_v41 = vshra.s32 %v1018_v32, 4  ;;  %vm3576_vm7 = vcmp.eq.s32.totalorder %v1047_v34, %v3560_v24  ;;  %vm3581_vm8 = vcmp.eq.s32.totalorder %v1032_v8, %v3560_v24  ;;  %vm3586_vm9 = vcmp.eq.s32.totalorder %v1048_v36, %v3560_v24 }
 0x1a8   :  { %v493_v47 = vpack.c.bf16 %v491_v44, %v490_v42  ;;  %v489_v48 = vmax.f32 %v485_v45, 0.0  ;;  %v1031_v33 = vshra.s32 %v1003_v25, 4  ;;  %v5332_v42 = vmov 0 }
 0x1a9   :  { %v5335_v44 = vmov 0  ;;  %v5338_v45 = vmov 0  ;;  %vm3613_vm10 = vcmp.eq.s32.totalorder %v1029_v37, %v3560_v24  ;;  %vm3618_vm11 = vcmp.eq.s32.totalorder %v1030_v38, %v3560_v24 }
 0x1aa   :  { %v492_v49 = vpack.c.bf16 %v489_v48, %v488_v46  ;;  %3044 = vmatprep.subr.bf16.mxu1 %v493_v47  ;;  %v5336_v44 = vsel %vm3576_vm7, 4294967295, %v5335_v44  ;;  %v5339_v45 = vsel %vm3581_vm8, 4294967295, %v5338_v45  ;;  %v5341_v46 = vmov 0 }
 0x1ab   :  { %3045 = vmatpush3.bf16.msra.mxu1 %v493_v47  ;;  %5337 = vst [vmem:[#allocation7_spill] sm:$0xff] %v5336_v44  ;;  %5340 = vst [vmem:[#allocation8_spill] sm:$0xff] %v5339_v45  ;;  %v5342_v46 = vsel %vm3586_vm9, 4294967295, %v5341_v46  ;;  %v3598_v48 = vsel %vm3576_vm7, 1.0, %v5170_v22  ;;  %vm3637_vm12 = vcmp.eq.s32.totalorder %v1045_v40, %v3560_v24  ;;  %vm3642_vm13 = vcmp.eq.s32.totalorder %v1046_v41, %v3560_v24 }
 0x1ac   :  { %3046 = vmatprep.subr.bf16.mxu1 %v492_v49  ;;  %3068 = vmatprep.mubr.msk.bf16.mxu0 %vm5143_vm6, %v492_v49  ;;  %5343 = vst [vmem:[#allocation9_spill] sm:$0xff] %v5342_v46  ;;  %v1013_v28 = vadd.s32 192, %v3341_v7  ;;  %v1014_v29 = vadd.s32 200, %v3341_v7  ;;  %v5364_v30 = vmov 0  ;;  %v5367_v31 = vmov 0 }
 0x1ad   :  { %3069 = vmatmul.mubr.msk.bf16.vlgmr.msra.gmra.mxu0 %vm5143_vm6, %v493_v47  ;;  %v5372_v41 = vmov 0 }
 0x1ae   :  { %v1041_v38 = vshra.s32 %v1013_v28, 4  ;;  %v1042_v40 = vshra.s32 %v1014_v29, 4  ;;  %v994_v28 = vadd.s32 40, %v3341_v7  ;;  %v5388_v29 = vmov 0 }
 0x1af   :  { %3047 = vmatpush3.bf16.msra.mxu1 %v492_v49 }
 0x1b0   :  { %3052 = vmatprep.subr.bf16.mxu1 %v493_v47  ;;  %vm3743_vm5 = vcmp.eq.s32.totalorder %v1041_v38, %v3560_v24 }
 0x1b2   :  { %3049 = vmatmul.mubr.msk.bf16.vlgmr.msra.gmra.mxu1 %vm87_vm0, %v3428_v39  ;;  %v3182_v39 = vld [vmem:[%s5136_s1 + $0xb8] sm:$0xff]  }
 0x1b3   :  { %3053 = vmatpush3.bf16.msra.mxu1 %v493_v47  ;;  %3056 = vmatprep.mubr.msk.bf16.mxu1 %vm87_vm0, %v3410_v35  ;;  %v3181_v35 = vld [vmem:[%s5136_s1 + $0x68] sm:$0xff]  }
 0x1b4   :  { %3054 = vmatprep.subr.bf16.mxu1 %v492_v49  ;;  %3084 = vmatprep.subr.bf16.mxu0 %v3182_v39 }
 0x1b5   :  { %3085 = vmatpush3.bf16.msra.mxu0 %v3182_v39  ;;  %v5344_v39 = vmov 0 }
 0x1b6   :  { %3086 = vmatprep.subr.bf16.mxu0 %v3184_v52  ;;  %v5345_v39 = vsel %vm3613_vm10, 4294967295, %v5344_v39 }
 0x1b7   :  { %3055 = vmatpush3.bf16.msra.mxu1 %v492_v49  ;;  %v3603_v49 = vsel %vm3581_vm8, 1.0, %v5170_v22  ;;  %5346 = vst [vmem:[#allocation10_spill] sm:$0xff] %v5345_v39 }
 0x1b8   :  { %3072 = vmatprep.subr.bf16.mxu1 %v3179_v50 }
 0x1b9   :  { %3087 = vmatpush3.bf16.msra.mxu0 %v3184_v52  ;;  %v1161_v52 = vmul.f32 0.5, %v3603_v49 }
 0x1ba   :  { %3057 = vmatmul.mubr.msk.bf16.vlgmr.msra.gmra.mxu1 %vm87_vm0, %v3439_v43  ;;  %v3183_v43 = vld [vmem:[%s5136_s1 + $0x60] sm:$0xff]   ;;  %3088 = vmatprep.subr.bf16.mxu0 %v3185_v53  ;;  %vm3571_vm0 = vcmp.eq.s32.totalorder %v1031_v33, %v3560_v24 }
 0x1bb   :  { %3073 = vmatpush3.bf16.msra.mxu1 %v3179_v50  ;;  %v5333_v42 = vsel %vm3571_vm0, 4294967295, %v5332_v42  ;;  %v3593_v47 = vsel %vm3571_vm0, 1.0, %v5170_v22  ;;  %v3608_v50 = vsel %vm3586_vm9, 1.0, %v5170_v22 }
 0x1bc   :  { %3074 = vmatprep.subr.bf16.mxu1 %v3180_v51  ;;  %5334 = vst [vmem:[#allocation6_spill] sm:$0xff] %v5333_v42 }
 0x1bd   :  { %3089 = vmatpush3.bf16.msra.mxu0 %v3185_v53  ;;  %v1177_v53 = vmul.f32 0.5, %v3608_v50 }
 0x1be   :  { %3090 = vmatprep.subr.bf16.mxu0 %v3186_v54 }
 0x1bf   :  { %3075 = vmatpush3.bf16.msra.mxu1 %v3180_v51  ;;  %v1160_v51 = vmul.f32 0.5, %v3593_v47 }
 0x1c0   :  { %3076 = vmatprep.subr.bf16.mxu1 %v3181_v35 }
 0x1c1   :  { %3091 = vmatpush3.bf16.msra.mxu0 %v3186_v54  ;;  %1238 = vrot.lane.b32.xlu0 %v1160_v51, %s3280_s2  ;;  %v3629_v54 = vsel %vm3613_vm10, 1.0, %v5170_v22  ;;  %v5375_v51 = vmov 0 }
 0x1c3   :  { %3077 = vmatpush3.bf16.msra.mxu1 %v3181_v35  ;;  %v1176_v35 = vmul.f32 0.5, %v3598_v48 }
 0x1c4   :  { %3078 = vmatprep.subr.bf16.mxu1 %v3183_v43 }
 0x1c5   :  { %1270 = vrot.lane.b32.xlu1 %v1176_v35, %s3280_s2  ;;  %1240 = vrot.lane.b32.xlu0 %v1161_v52, %s3280_s2  ;;  %v995_v35 = vadd.s32 48, %v3341_v7  ;;  %v996_v52 = vadd.s32 56, %v3341_v7 }
 0x1c7   :  { %3079 = vmatpush3.bf16.msra.mxu1 %v3183_v43  ;;  %v5347_v43 = vmov 0 }
 0x1c8   :  { %948 = vmatprep.subr.bf16.mxu1 %v3189_v4  ;;  %v5348_v43 = vsel %vm3618_vm11, 4294967295, %v5347_v43  ;;  %v997_v4 = vadd.s32 64, %v3341_v7 }
 0x1c9   :  { %5349 = vst [vmem:[#allocation11_spill] sm:$0xff] %v5348_v43  ;;  %1272 = vrot.lane.b32.xlu1 %v1177_v53, %s3280_s2 }
 0x1ca   :  { %v1025_v32 = vshra.s32 %v997_v4, 4  ;;  %v1012_v4 = vadd.s32 184, %v3341_v7 }
 0x1cc   :  { %vm3717_vm3 = vcmp.eq.s32.totalorder %v1025_v32, %v3560_v24  ;;  %v5391_v32 = vmov 0 }
 0x1cd   :  { %v5373_v41 = vsel %vm3717_vm3, 4294967295, %v5372_v41 }
 0x1ce   :  { %5374 = vst [vmem:[#allocation22_spill] sm:$0xff] %v5373_v41 }
 0x272   :  { %v3050_v55 = vpop.f32.mrf.mxu1 }
 0x274   :  { %v528_v56 = vpop.f32.mrf.mxu1 }
 0x276   :  { %v3051_v57 = vpop.f32.mrf.mxu1 }
 0x277   :  { %v602_v60 = vpack.c.bf16 %v3051_v57, %v3050_v55  ;;  %v3634_v55 = vsel %vm3618_vm11, 1.0, %v5170_v22  ;;  %v5353_v57 = vmov 0 }
 0x278   :  { %v531_v58 = vpop.f32.mrf.mxu1  ;;  %v5354_v57 = vsel %vm3642_vm13, 4294967295, %v5353_v57 }
 0x279   :  { %v601_v59 = vpack.c.bf16 %v531_v58, %v528_v56  ;;  %v5350_v56 = vmov 0  ;;  %5355 = vst [vmem:[#allocation13_spill] sm:$0xff] %v5354_v57  ;;  %v999_v58 = vadd.s32 80, %v3341_v7 }
 0x27a   :  { %v3058_v61 = vpop.f32.mrf.mxu1  ;;  %v5351_v56 = vsel %vm3637_vm12, 4294967295, %v5350_v56 }
 0x27b   :  { %3080 = vmatprep.mubr.msk.bf16.mxu1 %vm5143_vm6, %v601_v59  ;;  %5352 = vst [vmem:[#allocation12_spill] sm:$0xff] %v5351_v56  ;;  %v1000_v59 = vadd.s32 88, %v3341_v7 }
 0x27c   :  { %v577_v62 = vpop.f32.mrf.mxu1  ;;  %3081 = vmatmul.mubr.msk.bf16.vlgmr.msra.gmra.mxu1 %vm5143_vm6, %v602_v60  ;;  %v1015_v60 = vadd.s32 208, %v3341_v7 }
 0x27d   :  { %949 = vmatpush1.bf16.msra.mxu1 %v3187_v3  ;;  %972 = vmatprep.mubr.bf16.mxu1 %v5162_v23  ;;  %v3662_v3 = vsel %vm3642_vm13, 1.0, %v5170_v22 }
 0x27e   :  { %v3059_v63 = vpop.f32.mrf.mxu1  ;;  %950 = vmatprep.subr.bf16.mxu1 %v3192_v5  ;;  %v998_v5 = vadd.s32 72, %v3341_v7  ;;  %v1175_v25 = vmul.f32 0.5, %v3662_v3 }
 0x27f   :  { %v780_v2 = vpack.c.bf16 %v3059_v63, %v3058_v61  ;;  %v1016_v61 = vadd.s32 216, %v3341_v7  ;;  %v1159_v63 = vmul.f32 0.5, %v3634_v55 }
 0x280   :  { %v580_v0 = vpop.f32.mrf.mxu1  ;;  %v1026_v33 = vshra.s32 %v998_v5, 4 }
 0x281   :  { %v779_v1 = vpack.c.bf16 %v580_v0, %v577_v62  ;;  %951 = vmatpush1.bf16.msra.mxu1 %v3190_v6  ;;  %v1158_v62 = vmul.f32 0.5, %v3629_v54  ;;  %v1027_v0 = vshra.s32 %v999_v58, 4  ;;  %v5356_v6 = vmov 0  ;;  %1236 = vrot.lane.b32.xlu1 %v1159_v63, %s3280_s2 }
 0x282   :  { %952 = vmatprep.subr.bf16.mxu1 %v3195_v11  ;;  %v5359_v11 = vmov 0  ;;  %vm3722_vm4 = vcmp.eq.s32.totalorder %v1026_v33, %v3560_v24  ;;  %v1023_v63 = vshra.s32 %v995_v35, 4 }
 0x283   :  { %3092 = vmatprep.mubr.msk.bf16.mxu0 %vm5143_vm6, %v779_v1  ;;  %v1028_v1 = vshra.s32 %v1000_v59, 4  ;;  %vm3667_vm14 = vcmp.eq.s32.totalorder %v1027_v0, %v3560_v24  ;;  %1234 = vrot.lane.b32.xlu0 %v1158_v62, %s3280_s2  ;;  %v5376_v51 = vsel %vm3722_vm4, 4294967295, %v5375_v51  ;;  %v3735_v59 = vsel %vm3717_vm3, 1.0, %v5170_v22 }
 0x284   :  { %3093 = vmatmul.mubr.msk.bf16.vlgmr.msra.gmra.mxu0 %vm5143_vm6, %v780_v2  ;;  %v3657_v2 = vsel %vm3637_vm12, 1.0, %v5170_v22  ;;  %v5357_v6 = vsel %vm3667_vm14, 4294967295, %v5356_v6  ;;  %v3683_v26 = vsel %vm3667_vm14, 1.0, %v5170_v22  ;;  %5377 = vst [vmem:[#allocation23_spill] sm:$0xff] %v5376_v51  ;;  %5378 = vst [vmem:[#allocation24_spill] sm:$0xff] %v3735_v59  ;;  %vm3748_vm6 = vcmp.eq.s32.totalorder %v1042_v40, %v3560_v24 }
 0x285   :  { %953 = vmatpush1.bf16.msra.mxu1 %v3193_v13  ;;  %5358 = vst [vmem:[#allocation14_spill] sm:$0xff] %v5357_v6  ;;  %vm3672_vm15 = vcmp.eq.s32.totalorder %v1028_v1, %v3560_v24  ;;  %v1043_v13 = vshra.s32 %v1015_v60, 4  ;;  %5362 = vst [vmem:[#allocation16_spill] sm:$0xff] %v3683_v26  ;;  %1268 = vrot.lane.b32.xlu1 %v1175_v25, %s3280_s2  ;;  %v1156_v34 = vmul.f32 0.5, %v3683_v26  ;;  %v3740_v60 = vsel %vm3722_vm4, 1.0, %v5170_v22 }
 0x286   :  { %954 = vmatprep.subr.bf16.mxu1 %v3198_v18  ;;  %v5360_v11 = vsel %vm3672_vm15, 4294967295, %v5359_v11  ;;  %v1044_v18 = vshra.s32 %v1016_v61, 4  ;;  %v3688_v27 = vsel %vm3672_vm15, 1.0, %v5170_v22  ;;  %5379 = vst [vmem:[#allocation25_spill] sm:$0xff] %v3740_v60  ;;  %v5380_v61 = vmov 0 }
 0x287   :  { %5361 = vst [vmem:[#allocation15_spill] sm:$0xff] %v5360_v11  ;;  %5363 = vst [vmem:[#allocation17_spill] sm:$0xff] %v3688_v27  ;;  %vm3693_vm1 = vcmp.eq.s32.totalorder %v1043_v13, %v3560_v24  ;;  %v1157_v8 = vmul.f32 0.5, %v3688_v27  ;;  %v5381_v61 = vsel %vm3743_vm5, 4294967295, %v5380_v61  ;;  %v5383_v62 = vmov 0 }
 0x288   :  { %v5365_v30 = vsel %vm3693_vm1, 4294967295, %v5364_v30  ;;  %vm3698_vm2 = vcmp.eq.s32.totalorder %v1044_v18, %v3560_v24  ;;  %v3709_v36 = vsel %vm3693_vm1, 1.0, %v5170_v22  ;;  %5382 = vst [vmem:[#allocation26_spill] sm:$0xff] %v5381_v61  ;;  %v5384_v62 = vsel %vm3748_vm6, 4294967295, %v5383_v62 }
 0x289   :  { %955 = vmatpush1.bf16.msra.mxu1 %v3196_v19  ;;  %v1174_v19 = vmul.f32 0.5, %v3657_v2  ;;  %5366 = vst [vmem:[#allocation18_spill] sm:$0xff] %v5365_v30  ;;  %v5368_v31 = vsel %vm3698_vm2, 4294967295, %v5367_v31  ;;  %5370 = vst [vmem:[#allocation20_spill] sm:$0xff] %v3709_v36  ;;  %v3714_v37 = vsel %vm3698_vm2, 1.0, %v5170_v22  ;;  %1232 = vrot.lane.b32.xlu1 %v1157_v8, %s3280_s2  ;;  %v1172_v53 = vmul.f32 0.5, %v3709_v36 }
 0x28a   :  { %5369 = vst [vmem:[#allocation19_spill] sm:$0xff] %v5368_v31  ;;  %5371 = vst [vmem:[#allocation21_spill] sm:$0xff] %v3714_v37  ;;  %v1173_v58 = vmul.f32 0.5, %v3714_v37  ;;  %v1024_v0 = vshra.s32 %v996_v52, 4  ;;  %v1011_v1 = vadd.s32 176, %v3341_v7  ;;  %v1154_v5 = vmul.f32 0.5, %v3735_v59 }
 0x28b   :  { %1266 = vrot.lane.b32.xlu0 %v1174_v19, %s3280_s2  ;;  %5385 = vst [vmem:[#allocation27_spill] sm:$0xff] %v5384_v62  ;;  %v1155_v13 = vmul.f32 0.5, %v3740_v60  ;;  %v3761_v18 = vsel %vm3743_vm5, 1.0, %v5170_v22  ;;  %v3766_v19 = vsel %vm3748_vm6, 1.0, %v5170_v22  ;;  %v993_v25 = vadd.s32 32, %v3341_v7 }
 0x28c   :  { %5386 = vst [vmem:[#allocation28_spill] sm:$0xff] %v3761_v18  ;;  %5387 = vst [vmem:[#allocation29_spill] sm:$0xff] %v3766_v19  ;;  %vm3771_vm3 = vcmp.eq.s32.totalorder %v1023_v63, %v3560_v24  ;;  %vm3776_vm4 = vcmp.eq.s32.totalorder %v1024_v0, %v3560_v24  ;;  %v1039_v33 = vshra.s32 %v1011_v1, 4  ;;  %v1170_v8 = vmul.f32 0.5, %v3761_v18 }
 0x28d   :  { %1264 = vrot.lane.b32.xlu1 %v1173_v58, %s3280_s2  ;;  %v5389_v29 = vsel %vm3771_vm3, 4294967295, %v5388_v29  ;;  %v5392_v32 = vsel %vm3776_vm4, 4294967295, %v5391_v32  ;;  %v1171_v38 = vmul.f32 0.5, %v3766_v19  ;;  %v1009_v40 = vadd.s32 160, %v3341_v7 }
 0x28e   :  { %5390 = vst [vmem:[#allocation30_spill] sm:$0xff] %v5389_v29  ;;  %5393 = vst [vmem:[#allocation31_spill] sm:$0xff] %v5392_v32  ;;  %v3788_v35 = vsel %vm3771_vm3, 1.0, %v5170_v22  ;;  %v3793_v52 = vsel %vm3776_vm4, 1.0, %v5170_v22  ;;  %v1010_v58 = vadd.s32 168, %v3341_v7  ;;  %vm3797_vm5 = vcmp.eq.s32.totalorder %v1039_v33, %v3560_v24 }
 0x28f   :  { %1230 = vrot.lane.b32.xlu0 %v1156_v34, %s3280_s2  ;;  %v1040_v34 = vshra.s32 %v1012_v4, 4  ;;  %5394 = vst [vmem:[#allocation32_spill] sm:$0xff] %v3788_v35  ;;  %5395 = vst [vmem:[#allocation33_spill] sm:$0xff] %v3793_v52  ;;  %v5396_v63 = vmov 0  ;;  %v5399_v0 = vmov 0  ;;  %v1022_v1 = vshra.s32 %v994_v28, 4 }
 0x290   :  { %v5397_v63 = vsel %vm3797_vm5, 4294967295, %v5396_v63  ;;  %v5156_v4 = vmov 1.0   ;;  %v5404_v33 = vmov 0 }
 0x291   :  { %1228 = vrot.lane.b32.xlu1 %v1155_v13, %s3280_s2  ;;  %5398 = vst [vmem:[#allocation34_spill] sm:$0xff] %v5397_v63  ;;  %vm3802_vm6 = vcmp.eq.s32.totalorder %v1040_v34, %v3560_v24  ;;  %2832 = vmatprep.subr.msk.mxu1 %vm3586_vm9, %v5156_v4  ;;  %v1153_v13 = vmul.f32 0.5, %v3793_v52  ;;  %vm3829_vm3 = vcmp.eq.s32.totalorder %v1022_v1, %v3560_v24  ;;  %v5407_v34 = vmov 0 }
 0x292   :  { %v5400_v0 = vsel %vm3802_vm6, 4294967295, %v5399_v0  ;;  %v3821_v28 = vsel %vm3802_vm6, 1.0, %v5170_v22  ;;  %v5408_v34 = vsel %vm3829_vm3, 4294967295, %v5407_v34  ;;  %v3845_v1 = vsel %vm3829_vm3, 1.0, %v5170_v22 }
 0x293   :  { %1262 = vrot.lane.b32.xlu0 %v1172_v53, %s3280_s2  ;;  %v1021_v53 = vshra.s32 %v993_v25, 4  ;;  %5401 = vst [vmem:[#allocation35_spill] sm:$0xff] %v5400_v0  ;;  %v3816_v25 = vsel %vm3797_vm5, 1.0, %v5170_v22  ;;  %5403 = vst [vmem:[#allocation37_spill] sm:$0xff] %v3821_v28  ;;  %v1169_v4 = vmul.f32 0.5, %v3821_v28  ;;  %vm3883_vm3 = vcmp.eq.s32.totalorder %v45_v21, %v3560_v24 }
 0x294   :  { %5402 = vst [vmem:[#allocation36_spill] sm:$0xff] %v3816_v25  ;;  %5409 = vst [vmem:[#allocation39_spill] sm:$0xff] %v5408_v34  ;;  %v1168_v12 = vmul.f32 0.5, %v3816_v25  ;;  %v5429_v21 = vmov 0 }
 0x295   :  { %1260 = vrot.lane.b32.xlu1 %v1171_v38, %s3280_s2  ;;  %vm3824_vm9 = vcmp.eq.s32.totalorder %v1021_v53, %v3560_v24  ;;  %v1038_v38 = vshra.s32 %v1010_v58, 4  ;;  %5411 = vst [vmem:[#allocation41_spill] sm:$0xff] %v3845_v1  ;;  %v5415_v58 = vmov 0 }
 0x296   :  { %v5405_v33 = vsel %vm3824_vm9, 4294967295, %v5404_v33  ;;  %v3840_v53 = vsel %vm3824_vm9, 1.0, %v5170_v22  ;;  %vm3876_vm9 = vcmp.eq.s32.totalorder %v44_v20, %v3560_v24  ;;  %v5426_v20 = vmov 0.0  }
 0x297   :  { %1226 = vrot.lane.b32.xlu0 %v1154_v5, %s3280_s2  ;;  %v1152_v5 = vmul.f32 0.5, %v3788_v35  ;;  %5406 = vst [vmem:[#allocation38_spill] sm:$0xff] %v5405_v33  ;;  %5410 = vst [vmem:[#allocation40_spill] sm:$0xff] %v3840_v53  ;;  %vm3853_vm4 = vcmp.eq.s32.totalorder %v1038_v38, %v3560_v24  ;;  %v1150_v23 = vmul.f32 0.5, %v3840_v53  ;;  %v3899_v15 = vsel %vm3883_vm3, 1.0, %v5426_v20 }
 0x298   :  { %v5416_v58 = vsel %vm3853_vm4, 4294967295, %v5415_v58  ;;  %v3871_v38 = vsel %vm3853_vm4, 1.0, %v5170_v22  ;;  %5428 = vst [vmem:[#allocation49_spill] sm:$0xff] %v3899_v15 }
 0x299   :  { %1224 = vrot.lane.b32.xlu1 %v1153_v13, %s3280_s2  ;;  %5417 = vst [vmem:[#allocation43_spill] sm:$0xff] %v5416_v58  ;;  %v1008_v13 = vadd.s32 152, %v3341_v7  ;;  %5419 = vst [vmem:[#allocation45_spill] sm:$0xff] %v3871_v38  ;;  %v1167_v14 = vmul.f32 0.5, %v3871_v38  ;;  %v5437_v38 = vshra.s32 %v3341_v7, 4 }
 0x29b   :  { %1258 = vrot.lane.b32.xlu0 %v1170_v8, %s3280_s2  ;;  %v1037_v8 = vshra.s32 %v1009_v40, 4  ;;  %v5412_v40 = vmov 0  ;;  %v1036_v46 = vshra.s32 %v1008_v13, 4  ;;  %v1006_v13 = vadd.s32 136, %v3341_v7 }
 0x29d   :  { %vm3848_vm5 = vcmp.eq.s32.totalorder %v1037_v8, %v3560_v24  ;;  %1256 = vrot.lane.b32.xlu1 %v1169_v4, %s3280_s2  ;;  %v1151_v8 = vmul.f32 0.5, %v3845_v1  ;;  %v5423_v4 = vmov 0  ;;  %v3894_v1 = vsel %vm3876_vm9, 1.0, %v5426_v20 }
 0x29e   :  { %v5413_v40 = vsel %vm3848_vm5, 4294967295, %v5412_v40  ;;  %v3866_v17 = vsel %vm3848_vm5, 1.0, %v5170_v22  ;;  %v5424_v4 = vsel %vm3883_vm3, 4294967295, %v5423_v4  ;;  %5427 = vst [vmem:[#allocation48_spill] sm:$0xff] %v3894_v1  ;;  %vm3907_vm4 = vcmp.eq.s32.totalorder %v1036_v46, %v3560_v24 }
 0x29f   :  { %1222 = vrot.lane.b32.xlu0 %v1152_v5, %s3280_s2  ;;  %5414 = vst [vmem:[#allocation42_spill] sm:$0xff] %v5413_v40  ;;  %v1007_v5 = vadd.s32 144, %v3341_v7  ;;  %5418 = vst [vmem:[#allocation44_spill] sm:$0xff] %v3866_v17  ;;  %v1166_v22 = vmul.f32 0.5, %v3866_v17  ;;  %v3925_v46 = vsel %vm3907_vm4, 1.0, %v5426_v20  ;;  %v1034_v17 = vshra.s32 %v1006_v13, 4 }
 0x2a0   :  { %5425 = vst [vmem:[#allocation47_spill] sm:$0xff] %v5424_v4  ;;  %5436 = vst [vmem:[#allocation53_spill] sm:$0xff] %v3925_v46  ;;  %v5450_v13 = vmov 0 }
 0x2a1   :  { %v1035_v10 = vshra.s32 %v1007_v5, 4  ;;  %1220 = vrot.lane.b32.xlu1 %v1151_v8, %s3280_s2  ;;  %v1005_v5 = vadd.s32 128, %v3341_v7  ;;  %v1148_v8 = vmul.f32 0.5, %v3894_v1  ;;  %v5442_v1 = vmov 0 }
 0x2a3   :  { %1254 = vrot.lane.b32.xlu0 %v1168_v12, %s3280_s2  ;;  %v5420_v12 = vmov 0  ;;  %vm3902_vm5 = vcmp.eq.s32.totalorder %v1035_v10, %v3560_v24  ;;  %v1149_v10 = vmul.f32 0.5, %v3899_v15  ;;  %v5441_v15 = vshra.s32 %v3350_v9, 4 }
 0x2a4   :  { %v5421_v12 = vsel %vm3876_vm9, 4294967295, %v5420_v12  ;;  %v5430_v21 = vsel %vm3902_vm5, 4294967295, %v5429_v21  ;;  %v3920_v53 = vsel %vm3902_vm5, 1.0, %v5426_v20  ;;  %vm3930_vm9 = vcmp.eq.s32.totalorder %v5437_v38, %v3560_v24 }
 0x2a5   :  { %5422 = vst [vmem:[#allocation46_spill] sm:$0xff] %v5421_v12  ;;  %5431 = vst [vmem:[#allocation50_spill] sm:$0xff] %v5430_v21  ;;  %1252 = vrot.lane.b32.xlu1 %v1167_v14, %s3280_s2  ;;  %v1033_v14 = vshra.s32 %v1005_v5, 4  ;;  %vm3937_vm3 = vcmp.eq.s32.totalorder %v5441_v15, %v3560_v24  ;;  %v1164_v52 = vmul.f32 0.5, %v3920_v53  ;;  %v1165_v38 = vmul.f32 0.5, %v3925_v46 }
 0x2a6   :  { %5435 = vst [vmem:[#allocation52_spill] sm:$0xff] %v3920_v53  ;;  %v5443_v1 = vsel %vm3937_vm3, 4294967295, %v5442_v1  ;;  %v3948_v5 = vsel %vm3930_vm9, 1.0, %v5426_v20  ;;  %v3953_v9 = vsel %vm3937_vm3, 1.0, %v5426_v20  ;;  %v5447_v15 = vmov 0 }
 0x2a7   :  { %1218 = vrot.lane.b32.xlu0 %v1150_v23, %s3280_s2  ;;  %v5432_v23 = vmov 0  ;;  %5444 = vst [vmem:[#allocation55_spill] sm:$0xff] %v5443_v1  ;;  %5445 = vst [vmem:[#allocation56_spill] sm:$0xff] %v3948_v5  ;;  %vm3956_vm5 = vcmp.eq.s32.totalorder %v1033_v14, %v3560_v24 }
 0x2a8   :  { %v5433_v23 = vsel %vm3907_vm4, 4294967295, %v5432_v23  ;;  %5446 = vst [vmem:[#allocation57_spill] sm:$0xff] %v3953_v9  ;;  %v5448_v15 = vsel %vm3956_vm5, 4294967295, %v5447_v15  ;;  %vm3961_vm4 = vcmp.eq.s32.totalorder %v1034_v17, %v3560_v24  ;;  %v3972_v14 = vsel %vm3956_vm5, 1.0, %v5426_v20 }
 0x2a9   :  { %5434 = vst [vmem:[#allocation51_spill] sm:$0xff] %v5433_v23  ;;  %1216 = vrot.lane.b32.xlu1 %v1149_v10, %s3280_s2  ;;  %5449 = vst [vmem:[#allocation58_spill] sm:$0xff] %v5448_v15  ;;  %v5451_v13 = vsel %vm3961_vm4, 4294967295, %v5450_v13  ;;  %v1147_v10 = vmul.f32 0.5, %v3953_v9  ;;  %v3977_v17 = vsel %vm3961_vm4, 1.0, %v5426_v20  ;;  %v1162_v24 = vmul.f32 0.5, %v3972_v14 }
 0x2aa   :  { %5452 = vst [vmem:[#allocation59_spill] sm:$0xff] %v5451_v13  ;;  %5453 = vst [vmem:[#allocation60_spill] sm:$0xff] %v3972_v14 }
 0x2ab   :  { %1250 = vrot.lane.b32.xlu0 %v1166_v22, %s3280_s2  ;;  %v5438_v22 = vmov 0  ;;  %5454 = vst [vmem:[#allocation61_spill] sm:$0xff] %v3977_v17 }
 0x2ac   :  { %v5439_v22 = vsel %vm3930_vm9, 4294967295, %v5438_v22  ;;  %vm5459_vm9 = vcmask 523264  }
 0x2ad   :  { %5440 = vst [vmem:[#allocation54_spill] sm:$0xff] %v5439_v22  ;;  %1248 = vrot.lane.b32.xlu1 %v1165_v38, %s3280_s2  ;;  %v3070_v38 = vpop.f32.mrf.mxu0 }
 0x2af   :  { %1214 = vrot.lane.b32.xlu0 %v1148_v8, %s3280_s2  ;;  %v1146_v8 = vmul.f32 0.5, %v3948_v5  ;;  %v676_v9 = vpop.f32.mrf.mxu0 }
 0x2b1   :  { %1212 = vrot.lane.b32.xlu1 %v1147_v10, %s3280_s2  ;;  %v3071_v46 = vpop.f32.mrf.mxu0 }
 0x2b3   :  { %1246 = vrot.lane.b32.xlu0 %v1164_v52, %s3280_s2  ;;  %v1163_v52 = vmul.f32 0.5, %v3977_v17  ;;  %v679_v35 = vpop.f32.mrf.mxu0 }
 0x2b5   :  { %1244 = vrot.lane.b32.xlu1 %v1163_v52, %s3280_s2 }
 0x2b7   :  { %1210 = vrot.lane.b32.xlu0 %v1146_v8, %s3280_s2  ;;  %v5239_v8 = vsub.s32 1, %v3341_v7 }
 0x2bb   :  { %1242 = vrot.lane.b32.xlu0 %v1162_v24, %s3280_s2  ;;  %v867_v24 = vrot.slane %v3493_v16, %v5239_v8 }
 0x33c   :  { %v3082_v5 = vpop.f32.mrf.mxu1 }
 0x33d   :  { %v764_v26 = vadd.f32 %v3082_v5, %v3070_v38  ;;  %v5460_v5 = vmov 0  }
 0x33e   :  { %v755_v53 = vpop.f32.mrf.mxu1 }
 0x33f   :  { %v756_v25 = vadd.f32 %v755_v53, %v676_v9 }
 0x340   :  { %v3083_v20 = vpop.f32.mrf.mxu1 }
 0x341   :  { %v767_v19 = vadd.f32 %v3083_v20, %v3071_v46 }
 0x342   :  { %v758_v14 = vpop.f32.mrf.mxu1 }
 0x343   :  { %v759_v17 = vadd.f32 %v758_v14, %v679_v35 }
 0x344   :  { %v3094_v28 = vpop.f32.mrf.mxu0 }
 0x345   :  { %v862_v53 = vadd.f32 %v3094_v28, %v764_v26  ;;  %v4107_v28 = vpop.permute.xlu1 %1270 }
 0x346   :  { %v845_v60 = vpop.f32.mrf.mxu0 }
 0x347   :  { %v860_v10 = vadd.f32 %v845_v60, %v756_v25  ;;  %v4001_v46 = vadd.f32 %v867_v24, %v862_v53 }
 0x348   :  { %v3095_v59 = vpop.f32.mrf.mxu0 }
 0x349   :  { %v3989_v18 = vadd.f32 %v867_v24, %v860_v10  ;;  %v863_v37 = vadd.f32 %v3095_v59, %v767_v19  ;;  %5458 = vst [vmem:[#allocation65_spill] sm:$0xff] %v4001_v46  ;;  %v4105_v19 = vpop.permute.xlu0 %1238 }
 0x34a   :  { %v848_v52 = vpop.f32.mrf.mxu0 }
 0x34b   :  { %5455 = vst [vmem:[#allocation62_spill] sm:$0xff] %v3989_v18  ;;  %v861_v27 = vadd.f32 %v848_v52, %v759_v17  ;;  %v5243_v9 = vmax.f32 %v3989_v18, 0.0  ;;  %v3995_v25 = vadd.f32 %v867_v24, %v863_v37  ;;  %v5242_v37 = vmax.f32 %v4001_v46, 0.0  ;;  %v4111_v17 = vpop.permute.xlu1 %1272 }
 0x34d   :  { %v3991_v36 = vadd.f32 %v867_v24, %v861_v27  ;;  %5457 = vst [vmem:[#allocation64_spill] sm:$0xff] %v3995_v25  ;;  %v5461_v27 = vmov 1.0   ;;  %v5240_v26 = vmax.f32 %v3995_v25, 0.0  ;;  %v4109_v14 = vpop.permute.xlu0 %1240 }
 0x34f   :  { %5456 = vst [vmem:[#allocation63_spill] sm:$0xff] %v3991_v36  ;;  %v5241_v60 = vmax.f32 %v3991_v36, 0.0  ;;  %v885_v59 = vpack.c.bf16 %v5240_v26, %v5242_v37  ;;  %v4115_v20 = vpop.permute.xlu1 %1236 }
 0x351   :  { %v884_v35 = vpack.c.bf16 %v5241_v60, %v5243_v9  ;;  %v4113_v38 = vpop.permute.xlu0 %1234 }
 0x353   :  { %2642 = vmatmul.mubr.msk.bf16.vlgmr.msra.gmra.mxu1 %vm5459_vm9, %v884_v35  ;;  %v4119_v24 = vpop.permute.xlu1 %1268 }
 0x354   :  { %982 = vmatprep.mubr.bf16.mxu1 %v5460_v5  ;;  %2833 = vmatpush3.msk.msra.mxu1 %vm3581_vm8, %v5461_v27 }
 0x355   :  { %2834 = vmatprep.subr.msk.mxu1 %vm3576_vm7, %v5461_v27  ;;  %v4117_v10 = vpop.permute.xlu0 %1266 }
 0x356   :  { %2835 = vmatpush3.msk.msra.mxu1 %vm3571_vm0, %v5461_v27 }
 0x357   :  { %2836 = vmatprep.subr.msk.mxu1 %vm3642_vm13, %v5461_v27  ;;  %v4123_v53 = vpop.permute.xlu1 %1232 }
 0x358   :  { %2837 = vmatpush3.msk.msra.mxu1 %vm3618_vm11, %v5461_v27 }
 0x359   :  { %2838 = vmatprep.subr.msk.mxu1 %vm3637_vm12, %v5461_v27  ;;  %v4121_v52 = vpop.permute.xlu0 %1230 }
 0x35a   :  { %2839 = vmatpush3.msk.msra.mxu1 %vm3613_vm10, %v5461_v27  ;;  %vm5462_vm10 = vnez %v5384_v62 }
 0x35b   :  { %2643 = vmatmul.mubr.msk.bf16.gmra.mxu1 %vm5459_vm9, %v885_v59  ;;  %2840 = vmatprep.subr.msk.mxu1 %vm3698_vm2, %v5461_v27  ;;  %vm5463_vm9 = vnez %v5376_v51  ;;  %vm5464_vm2 = vnez %v5381_v61  ;;  %v4127_v5 = vpop.permute.xlu1 %1264 }
 0x35c   :  { %2841 = vmatpush3.msk.msra.mxu1 %vm3672_vm15, %v5461_v27  ;;  %vm5465_vm15 = vnez %v5373_v41 }
 0x35d   :  { %2842 = vmatprep.subr.msk.mxu1 %vm3693_vm1, %v5461_v27  ;;  %v4125_v35 = vpop.permute.xlu0 %1262 }
 0x35e   :  { %2843 = vmatpush3.msk.msra.mxu1 %vm3667_vm14, %v5461_v27  ;;  %vm5466_vm14 = vnez %v5392_v32 }
 0x35f   :  { %2844 = vmatprep.subr.msk.mxu1 %vm5462_vm10, %v5461_v27  ;;  %vm5467_vm10 = vnez %v5397_v63  ;;  %v4131_v8 = vpop.permute.xlu1 %1228 }
 0x360   :  { %2845 = vmatpush3.msk.msra.mxu1 %vm5463_vm9, %v5461_v27  ;;  %vm5468_vm9 = vnez %v5389_v29 }
 0x361   :  { %2846 = vmatprep.subr.msk.mxu1 %vm5464_vm2, %v5461_v27  ;;  %vm5469_vm2 = vnez %v5416_v58  ;;  %v4129_v59 = vpop.permute.xlu0 %1226 }
 0x362   :  { %2847 = vmatpush3.msk.msra.mxu1 %vm5465_vm15, %v5461_v27  ;;  %vm5470_vm15 = vnez %v5408_v34  ;;  %5478 = vst [vmem:[#allocation66_spill] sm:$0xff] %v4129_v59 }
 0x363   :  { %2848 = vmatprep.subr.msk.mxu1 %vm3802_vm6, %v5461_v27  ;;  %vm5471_vm6 = vnez %v5413_v40  ;;  %v4135_v60 = vpop.permute.xlu1 %1260 }
 0x364   :  { %2849 = vmatpush3.msk.msra.mxu1 %vm5466_vm14, %v5461_v27  ;;  %vm5472_vm14 = vnez %v5405_v33 }
 0x365   :  { %2850 = vmatprep.subr.msk.mxu1 %vm5467_vm10, %v5461_v27  ;;  %vm5473_vm10 = vnez %v5433_v23  ;;  %v4133_v26 = vpop.permute.xlu0 %1258 }
 0x366   :  { %2851 = vmatpush3.msk.msra.mxu1 %vm5468_vm9, %v5461_v27  ;;  %vm5474_vm9 = vnez %v5424_v4 }
 0x367   :  { %2852 = vmatprep.subr.msk.mxu1 %vm5469_vm2, %v5461_v27  ;;  %vm5475_vm2 = vnez %v5430_v21  ;;  %v4139_v9 = vpop.permute.xlu1 %1224  ;;  %v29_v21 = vld [vmem:[%s5141_s6 + $0x8] sm:$0xff] }
 0x368   :  { %2853 = vmatpush3.msk.msra.mxu1 %vm5470_vm15, %v5461_v27  ;;  %vm5476_vm15 = vnez %v5421_v12  ;;  %5480 = vst [vmem:[#allocation68_spill] sm:$0xff] %v4139_v9  ;;  %v888_v12 = vsub.s32 2, %v3341_v7 }
 0x369   :  { %2854 = vmatprep.subr.msk.mxu1 %vm5471_vm6, %v5461_v27  ;;  %v4137_v37 = vpop.permute.xlu0 %1222 }
 0x36a   :  { %2855 = vmatpush3.msk.msra.mxu1 %vm5472_vm14, %v5461_v27  ;;  %5479 = vst [vmem:[#allocation67_spill] sm:$0xff] %v4137_v37  ;;  %v4162_v4 = vrot.slane %v3493_v16, %v888_v12  ;;  %v4168_v34 = vrot.slane %v29_v21, %v888_v12 }
 0x36b   :  { %2856 = vmatprep.subr.msk.mxu1 %vm5473_vm10, %v5461_v27  ;;  %v4143_v36 = vpop.permute.xlu1 %1256 }
 0x36c   :  { %2857 = vmatpush3.msk.msra.mxu1 %vm5474_vm9, %v5461_v27  ;;  %vm5477_vm9 = vnez %v5439_v22  ;;  %5482 = vst [vmem:[#allocation70_spill] sm:$0xff] %v4143_v36 }
 0x36d   :  { %2858 = vmatprep.subr.msk.mxu1 %vm5475_vm2, %v5461_v27  ;;  %v4141_v25 = vpop.permute.xlu0 %1254 }
 0x36e   :  { %2859 = vmatpush3.msk.msra.mxu1 %vm5476_vm15, %v5461_v27  ;;  %5481 = vst [vmem:[#allocation69_spill] sm:$0xff] %v4141_v25 }
 0x36f   :  { %2860 = vmatprep.subr.msk.mxu1 %vm3961_vm4, %v5461_v27  ;;  %v4147_v18 = vpop.permute.xlu1 %1220 }
 0x370   :  { %2861 = vmatpush3.msk.msra.mxu1 %vm3937_vm3, %v5461_v27  ;;  %5484 = vst [vmem:[#allocation72_spill] sm:$0xff] %v4147_v18 }
 0x371   :  { %2862 = vmatprep.subr.msk.mxu1 %vm3956_vm5, %v5461_v27  ;;  %v4145_v46 = vpop.permute.xlu0 %1218 }
 0x372   :  { %2863 = vmatpush3.msk.msra.mxu1 %vm5477_vm9, %v5461_v27  ;;  %5483 = vst [vmem:[#allocation71_spill] sm:$0xff] %v4145_v46  ;;  %vm5494_vm9 = vcmask 523264  }
 0x373   :  { %v4151_v15 = vpop.permute.xlu1 %1252  ;;  %vm5571_vm5 = vmmov %vm5494_vm9 }
 0x374   :  { %5486 = vst [vmem:[#allocation74_spill] sm:$0xff] %v4151_v15  ;;  %vm5572_vm3 = vmmov %vm5571_vm5 }
 0x375   :  { %v4149_v22 = vpop.permute.xlu0 %1250  ;;  %vm5573_vm4 = vmmov %vm5572_vm3 }
 0x376   :  { %5485 = vst [vmem:[#allocation73_spill] sm:$0xff] %v4149_v22  ;;  %vm5574_vm15 = vmmov %vm5572_vm3 }
 0x377   :  { %v4155_v13 = vpop.permute.xlu1 %1216  ;;  %vm5575_vm2 = vmmov %vm5572_vm3 }
 0x378   :  { %5488 = vst [vmem:[#allocation76_spill] sm:$0xff] %v4155_v13  ;;  %vm5576_vm10 = vmmov %vm5575_vm2 }
 0x379   :  { %v4153_v1 = vpop.permute.xlu0 %1214 }
 0x37a   :  { %5487 = vst [vmem:[#allocation75_spill] sm:$0xff] %v4153_v1 }
 0x37b   :  { %v4166_v40 = vpop.permute.xlu1 %1248 }
 0x37c   :  { %5490 = vst [vmem:[#allocation78_spill] sm:$0xff] %v4166_v40 }
 0x37d   :  { %v4164_v23 = vpop.permute.xlu0 %1246 }
 0x37e   :  { %5489 = vst [vmem:[#allocation77_spill] sm:$0xff] %v4164_v23 }
 0x37f   :  { %v4181_v41 = vpop.permute.xlu1 %1212 }
 0x380   :  { %5492 = vst [vmem:[#allocation80_spill] sm:$0xff] %v4181_v41 }
 0x381   :  { %v4179_v16 = vpop.permute.xlu0 %1210 }
 0x382   :  { %5491 = vst [vmem:[#allocation79_spill] sm:$0xff] %v4179_v16 }
 0x385   :  { %v4214_v43 = vpop.permute.xlu0 %1242 }
 0x386   :  { %5495 = vst [vmem:[#allocation82_spill] sm:$0xff] %v4214_v43 }
 0x413   :  { %v974_v33 = vpop.f32.mrf.mxu1 }
 0x414   :  { %v4171_v29 = vadd.f32 %v974_v33, %v4162_v4 }
 0x415   :  { %v976_v58 = vpop.f32.mrf.mxu1 }
 0x416   :  { %v4174_v7 = vadd.f32 %v976_v58, %v4168_v34  ;;  %v1336_v33 = vmul.f32 %v4107_v28, %v4171_v29  ;;  %v1320_v21 = vmul.f32 %v4105_v19, %v4171_v29  ;;  %v1318_v57 = vmul.f32 %v4113_v38, %v4171_v29 }
 0x417   :  { %v978_v63 = vpop.f32.mrf.mxu1  ;;  %v1314_v44 = vmul.f32 %v4129_v59, %v4171_v29 }
 0x418   :  { %v4177_v32 = vadd.f32 %v978_v63, %v4162_v4  ;;  %v1368_v62 = vmul.f32 %v3598_v48, %v4174_v7 }
 0x419   :  { %v980_v0 = vpop.f32.mrf.mxu1 }
 0x41a   :  { %v4184_v61 = vadd.f32 %v980_v0, %v4168_v34  ;;  %v4188_v12 = vpack.c.bf16 %v4177_v32, %v4171_v29  ;;  %v1337_v58 = vmul.f32 %v4111_v17, %v4177_v32  ;;  %v1321_v51 = vmul.f32 %v4109_v14, %v4177_v32 }
 0x41b   :  { %v984_v63 = vpop.f32.mrf.mxu1  ;;  %v1335_v30 = vmul.f32 %v4119_v24, %v4177_v32  ;;  %v1319_v39 = vmul.f32 %v4115_v20, %v4177_v32  ;;  %v1329_v45 = vmul.f32 %v4143_v36, %v4177_v32  ;;  %v1313_v27 = vmul.f32 %v4139_v9, %v4177_v32 }
 0x41c   :  { %5493 = vst [vmem:[#allocation81_spill] sm:$0xff] %v4188_v12  ;;  %2830 = vmatprep.mubr.msk.bf16.mxu0 %vm5494_vm9, %v4188_v12  ;;  %v1386_v0 = vpack.c.bf16 %v1337_v58, %v1336_v33  ;;  %v1369_v6 = vmul.f32 %v3608_v50, %v4184_v61  ;;  %v1378_v31 = vpack.c.bf16 %v1321_v51, %v1320_v21  ;;  %v4219_v51 = vpop.permute.xlu1 %1244 }
 0x41d   :  { %v986_v11 = vpop.f32.mrf.mxu1  ;;  %v1334_v58 = vmul.f32 %v4117_v10, %v4171_v29  ;;  %5496 = vst [vmem:[#allocation83_spill] sm:$0xff] %v4219_v51  ;;  %v1377_v42 = vpack.c.bf16 %v1319_v39, %v1318_v57  ;;  %v1330_v39 = vmul.f32 %v4133_v26, %v4171_v29  ;;  %v1331_v57 = vmul.f32 %v4135_v60, %v4177_v32 }
 0x41e   :  { %v4209_v56 = vadd.f32 %v986_v11, %v4168_v34  ;;  %1433 = vrot.lane.b32.xlu1 %v1386_v0, %s3280_s2  ;;  %v1639_v33 = vpack.c.bf16 %v1369_v6, %v1368_v62  ;;  %1417 = vrot.lane.b32.xlu0 %v1378_v31, %s3280_s2  ;;  %v1333_v11 = vmul.f32 %v4127_v5, %v4177_v32 }
 0x41f   :  { %v1385_v21 = vpack.c.bf16 %v1335_v30, %v1334_v58  ;;  %v1317_v6 = vmul.f32 %v4123_v53, %v4177_v32  ;;  %v4227_v62 = vmul.f32 %v4214_v43, %v4171_v29  ;;  %v988_v0 = vpop.f32.mrf.mxu1  ;;  %v1332_v31 = vmul.f32 %v4125_v35, %v4171_v29 }
 0x420   :  { %2870 = vmatprep.subr.bf16.mxu1 %v1639_v33  ;;  %v1316_v30 = vmul.f32 %v4121_v52, %v4171_v29  ;;  %v4236_v33 = vmul.f32 %v4219_v51, %v4177_v32  ;;  %v1315_v58 = vmul.f32 %v4131_v8, %v4177_v32  ;;  %v1328_v12 = vmul.f32 %v4141_v25, %v4171_v29 }
 0x421   :  { %v1327_v43 = vmul.f32 %v4151_v15, %v4177_v32  ;;  %v1311_v51 = vmul.f32 %v4147_v18, %v4177_v32  ;;  %v1312_v36 = vmul.f32 %v4137_v37, %v4171_v29  ;;  %v4270_v18 = vadd.f32 %v984_v63, %v4162_v4 }
 0x422   :  { %1431 = vrot.lane.b32.xlu1 %v1385_v21, %s3280_s2  ;;  %1415 = vrot.lane.b32.xlu0 %v1377_v42, %s3280_s2  ;;  %v1384_v21 = vpack.c.bf16 %v1333_v11, %v1332_v31  ;;  %v1376_v42 = vpack.c.bf16 %v1317_v6, %v1316_v30  ;;  %v4258_v11 = vadd.f32 %v988_v0, %v4162_v4  ;;  %v990_v31 = vpop.f32.mrf.mxu1 }
 0x423   :  { %v1326_v6 = vmul.f32 %v4149_v22, %v4171_v29  ;;  %v1310_v30 = vmul.f32 %v4145_v46, %v4171_v29  ;;  %v1383_v0 = vpack.c.bf16 %v1331_v57, %v1330_v39  ;;  %v1375_v25 = vpack.c.bf16 %v1315_v58, %v1314_v44 }
 0x424   :  { %5497 = vst [vmem:[#allocation84_spill] sm:$0xff] %v4258_v11  ;;  %v1374_v9 = vpack.c.bf16 %v1313_v27, %v1312_v36  ;;  %v1325_v37 = vmul.f32 %v4166_v40, %v4177_v32  ;;  %v4277_v22 = vmul.f32 %v4155_v13, %v4177_v32  ;;  %v4280_v46 = vadd.f32 %v990_v31, %v4168_v34 }
 0x425   :  { %v1381_v15 = vpack.c.bf16 %v1327_v43, %v1326_v6  ;;  %v1373_v59 = vpack.c.bf16 %v1311_v51, %v1310_v30  ;;  %v1324_v4 = vmul.f32 %v4164_v23, %v4171_v29  ;;  %v1308_v44 = vmul.f32 %v4153_v1, %v4171_v29  ;;  %v5506_v6 = vld [vmem:[#allocation20_spill] sm:$0xff]  ;;  %v5538_v23 = vld [vmem:[#allocation53_spill] sm:$0xff] }
 0x426   :  { %1429 = vrot.lane.b32.xlu1 %v1384_v21, %s3280_s2  ;;  %1413 = vrot.lane.b32.xlu0 %v1376_v42, %s3280_s2  ;;  %v1382_v21 = vpack.c.bf16 %v1329_v45, %v1328_v12  ;;  %v4289_v45 = vmul.f32 %v4181_v41, %v4177_v32  ;;  %v4293_v36 = vmul.f32 %v4111_v17, %v4258_v11  ;;  %v5520_v42 = vld [vmem:[#allocation25_spill] sm:$0xff] }
 0x427   :  { %v4297_v43 = vmul.f32 %v4109_v14, %v4258_v11  ;;  %v4302_v34 = vmul.f32 %v4179_v16, %v4171_v29  ;;  %v4306_v27 = vmul.f32 %v4119_v24, %v4258_v11  ;;  %v4310_v32 = vmul.f32 %v4115_v20, %v4258_v11  ;;  %v5539_v16 = vld [vmem:[#allocation48_spill] sm:$0xff] }
 0x428   :  { %v4314_v17 = vmul.f32 %v4127_v5, %v4258_v11  ;;  %v1380_v14 = vpack.c.bf16 %v1325_v37, %v1324_v4  ;;  %v1372_v12 = vpack.c.bf16 %v4277_v22, %v1308_v44  ;;  %v4323_v29 = vmul.f32 %v4105_v19, %v4270_v18  ;;  %v5510_v4 = vld [vmem:[#allocation16_spill] sm:$0xff] }
 0x429   :  { %v4327_v24 = vmul.f32 %v4117_v10, %v4270_v18  ;;  %v4331_v20 = vmul.f32 %v4113_v38, %v4270_v18  ;;  %v4335_v37 = vmul.f32 %v4125_v35, %v4270_v18  ;;  %v4339_v22 = vmul.f32 %v4123_v53, %v4258_v11  ;;  %v5518_v35 = vld [vmem:[#allocation24_spill] sm:$0xff] }
 0x42a   :  { %1427 = vrot.lane.b32.xlu1 %v1383_v0, %s3280_s2  ;;  %1411 = vrot.lane.b32.xlu0 %v1375_v25, %s3280_s2  ;;  %v4319_v25 = vmul.f32 %v4107_v28, %v4270_v18  ;;  %v1371_v19 = vpack.c.bf16 %v4289_v45, %v4302_v34  ;;  %v4350_v10 = vmul.f32 %v4121_v52, %v4270_v18  ;;  %v5508_v0 = vld [vmem:[#allocation21_spill] sm:$0xff]  ;;  %v5526_v38 = vld [vmem:[#allocation32_spill] sm:$0xff] }
 0x42b   :  { %v4361_v63 = vmul.f32 %v4133_v26, %v4270_v18  ;;  %v4365_v51 = vmul.f32 %v4135_v60, %v4258_v11  ;;  %v4373_v52 = vmul.f32 %v3593_v47, %v4174_v7  ;;  %v4377_v39 = vmul.f32 %v3603_v49, %v4184_v61  ;;  %v5512_v45 = vld [vmem:[#allocation17_spill] sm:$0xff] }
 0x42c   :  { %v4383_v57 = vmul.f32 %v4131_v8, %v4258_v11  ;;  %v4387_v60 = vmul.f32 %v3657_v2, %v4174_v7  ;;  %v4391_v58 = vmul.f32 %v3662_v3, %v4184_v61  ;;  %v4398_v31 = vmul.f32 %v3629_v54, %v4174_v7 }
 0x42d   :  { %5499 = vst [vmem:[#allocation86_spill] sm:$0xff] %v4373_v52  ;;  %5500 = vst [vmem:[#allocation87_spill] sm:$0xff] %v4377_v39  ;;  %v4402_v8 = vmul.f32 %v3634_v55, %v4184_v61  ;;  %v4406_v30 = vmul.f32 %v5506_v6, %v4174_v7  ;;  %v4417_v44 = vmul.f32 %v5510_v4, %v4174_v7  ;;  %v5524_v52 = vld [vmem:[#allocation37_spill] sm:$0xff] }
 0x42e   :  { %1425 = vrot.lane.b32.xlu1 %v1382_v21, %s3280_s2  ;;  %1409 = vrot.lane.b32.xlu0 %v1374_v9, %s3280_s2  ;;  %v4369_v9 = vpack.c.bf16 %v4258_v11, %v4270_v18  ;;  %5501 = vst [vmem:[#allocation88_spill] sm:$0xff] %v4383_v57  ;;  %5502 = vst [vmem:[#allocation89_spill] sm:$0xff] %v4387_v60  ;;  %v4413_v21 = vmul.f32 %v5508_v0, %v4184_v61  ;;  %v5544_v57 = vld [vmem:[#allocation56_spill] sm:$0xff] }
 0x42f   :  { %5503 = vst [vmem:[#allocation90_spill] sm:$0xff] %v4391_v58  ;;  %5504 = vst [vmem:[#allocation91_spill] sm:$0xff] %v4398_v31  ;;  %v4421_v34 = vmul.f32 %v5512_v45, %v4184_v61  ;;  %v4435_v53 = vmul.f32 %v5518_v35, %v4174_v7  ;;  %v4443_v31 = vmul.f32 %v5520_v42, %v4184_v61 }
 0x430   :  { %5498 = vst [vmem:[#allocation85_spill] sm:$0xff] %v4369_v9  ;;  %5505 = vst [vmem:[#allocation92_spill] sm:$0xff] %v4402_v8  ;;  %v5522_v8 = vld [vmem:[#allocation36_spill] sm:$0xff]  ;;  %v4454_v39 = vmul.f32 %v5524_v52, %v4184_v61  ;;  %v4458_v28 = vmul.f32 %v5526_v38, %v4174_v7  ;;  %v4495_v13 = vmul.f32 %v5538_v23, %v4184_v61 }
 0x431   :  { %5507 = vst [vmem:[#allocation20_spill] sm:$0xff] %v4406_v30  ;;  %5509 = vst [vmem:[#allocation21_spill] sm:$0xff] %v4413_v21  ;;  %v4447_v60 = vmul.f32 %v5522_v8, %v4174_v7  ;;  %v5530_v30 = vld [vmem:[#allocation44_spill] sm:$0xff]  ;;  %v4521_v11 = vmul.f32 %v5544_v57, %v4174_v7 }
 0x432   :  { %1423 = vrot.lane.b32.xlu1 %v1381_v15, %s3280_s2  ;;  %1407 = vrot.lane.b32.xlu0 %v1373_v59, %s3280_s2  ;;  %5511 = vst [vmem:[#allocation16_spill] sm:$0xff] %v4417_v44  ;;  %5513 = vst [vmem:[#allocation17_spill] sm:$0xff] %v4421_v34  ;;  %v5514_v59 = vld [vmem:[#allocation28_spill] sm:$0xff]  ;;  %v5516_v15 = vld [vmem:[#allocation29_spill] sm:$0xff]  ;;  %v4469_v58 = vmul.f32 %v5530_v30, %v4174_v7 }
 0x433   :  { %v4427_v26 = vmul.f32 %v5514_v59, %v4174_v7  ;;  %v4431_v5 = vmul.f32 %v5516_v15, %v4184_v61  ;;  %5519 = vst [vmem:[#allocation24_spill] sm:$0xff] %v4435_v53  ;;  %5521 = vst [vmem:[#allocation25_spill] sm:$0xff] %v4443_v31  ;;  %v5528_v44 = vld [vmem:[#allocation33_spill] sm:$0xff]  ;;  %v5534_v21 = vld [vmem:[#allocation40_spill] sm:$0xff] }
 0x434   :  { %5523 = vst [vmem:[#allocation36_spill] sm:$0xff] %v4447_v60  ;;  %5525 = vst [vmem:[#allocation37_spill] sm:$0xff] %v4454_v39  ;;  %v4462_v34 = vmul.f32 %v5528_v44, %v4184_v61  ;;  %v4477_v9 = vmul.f32 %v5534_v21, %v4174_v7  ;;  %v5537_v31 = vld [vmem:[#allocation52_spill] sm:$0xff]  ;;  %v4499_v60 = vmul.f32 %v5539_v16, %v4174_v7  ;;  %v5543_v39 = vld [vmem:[#allocation61_spill] sm:$0xff] }
 0x435   :  { %5515 = vst [vmem:[#allocation28_spill] sm:$0xff] %v4427_v26  ;;  %5517 = vst [vmem:[#allocation29_spill] sm:$0xff] %v4431_v5  ;;  %v5532_v26 = vld [vmem:[#allocation45_spill] sm:$0xff]  ;;  %v4489_v41 = vmul.f32 %v5537_v31, %v4174_v7  ;;  %v4517_v40 = vmul.f32 %v5543_v39, %v4184_v61 }
 0x436   :  { %1421 = vrot.lane.b32.xlu1 %v1380_v14, %s3280_s2  ;;  %5527 = vst [vmem:[#allocation32_spill] sm:$0xff] %v4458_v28  ;;  %5529 = vst [vmem:[#allocation33_spill] sm:$0xff] %v4462_v34  ;;  %1405 = vrot.lane.b32.xlu0 %v1372_v12, %s3280_s2  ;;  %v4473_v5 = vmul.f32 %v5532_v26, %v4184_v61  ;;  %v5536_v14 = vld [vmem:[#allocation41_spill] sm:$0xff]  ;;  %v5541_v34 = vpack.c.bf16 %v4236_v33, %v4227_v62 }
 0x437   :  { %5531 = vst [vmem:[#allocation44_spill] sm:$0xff] %v4469_v58  ;;  %5535 = vst [vmem:[#allocation40_spill] sm:$0xff] %v4477_v9  ;;  %v4485_v53 = vmul.f32 %v5536_v14, %v4184_v61  ;;  %v5540_v12 = vld [vmem:[#allocation49_spill] sm:$0xff]  ;;  %v5542_v58 = vld [vmem:[#allocation60_spill] sm:$0xff]  ;;  %v4534_v9 = vmul.f32 %v3598_v48, %v4209_v56  ;;  %v4544_v62 = vmul.f32 %v3593_v47, %v4209_v56 }
 0x438   :  { %5533 = vst [vmem:[#allocation45_spill] sm:$0xff] %v4473_v5  ;;  %v4503_v28 = vmul.f32 %v5540_v12, %v4184_v61  ;;  %v4513_v5 = vmul.f32 %v5542_v58, %v4174_v7  ;;  %v4548_v33 = vmul.f32 %v3603_v49, %v4280_v46  ;;  %v4554_v48 = vmul.f32 %v3657_v2, %v4209_v56  ;;  %v5604_v49 = vld [vmem:[#allocation86_spill] sm:$0xff] }
 0x439   :  { %v4558_v7 = vmul.f32 %v3662_v3, %v4280_v46  ;;  %v5546_v47 = vpack.c.bf16 %v4293_v36, %v4319_v25  ;;  %v4578_v3 = vmul.f32 %v5506_v6, %v4209_v56  ;;  %v4588_v25 = vmul.f32 %v5508_v0, %v4280_v46 }
 0x43a   :  { %1419 = vrot.lane.b32.xlu1 %v5541_v34, %s3280_s2  ;;  %1403 = vrot.lane.b32.xlu0 %v1371_v19, %s3280_s2  ;;  %v5545_v34 = vld [vmem:[#allocation57_spill] sm:$0xff]  ;;  %v4540_v19 = vmul.f32 %v3608_v50, %v4280_v46  ;;  %v4562_v50 = vmul.f32 %v3629_v54, %v4209_v56  ;;  %v5547_v54 = vpack.c.bf16 %v4297_v43, %v4323_v29 }
 0x43b   :  { %v4530_v1 = vmul.f32 %v5545_v34, %v4184_v61  ;;  %v4574_v61 = vmul.f32 %v3634_v55, %v4280_v46  ;;  %v4592_v55 = vmul.f32 %v5510_v4, %v4209_v56  ;;  %v4596_v6 = vmul.f32 %v5512_v45, %v4280_v46 }
 0x43c   :  { %v4602_v43 = vmul.f32 %v5514_v59, %v4209_v56  ;;  %v4606_v29 = vmul.f32 %v5516_v15, %v4280_v46  ;;  %v4610_v0 = vmul.f32 %v5518_v35, %v4209_v56  ;;  %v4622_v59 = vmul.f32 %v5522_v8, %v4209_v56 }
 0x43d   :  { %v5548_v15 = vpack.c.bf16 %v4306_v27, %v4327_v24  ;;  %v4632_v4 = vmul.f32 %v5524_v52, %v4280_v46  ;;  %v4640_v8 = vmul.f32 %v5528_v44, %v4280_v46  ;;  %v5549_v27 = vpack.c.bf16 %v4310_v32, %v4331_v20 }
 0x43e   :  { %1812 = vrot.lane.b32.xlu1 %v5546_v47, %s3280_s2  ;;  %1796 = vrot.lane.b32.xlu0 %v5547_v54, %s3280_s2  ;;  %v4618_v54 = vmul.f32 %v5520_v42, %v4280_v46  ;;  %v4636_v42 = vmul.f32 %v5526_v38, %v4209_v56  ;;  %v4650_v52 = vmul.f32 %v5530_v30, %v4209_v56 }
 0x43f   :  { %v4654_v38 = vmul.f32 %v5532_v26, %v4280_v46  ;;  %v4658_v44 = vmul.f32 %v5534_v21, %v4209_v56  ;;  %v4666_v20 = vmul.f32 %v5536_v14, %v4280_v46  ;;  %v4670_v30 = vmul.f32 %v5537_v31, %v4209_v56  ;;  %v5551_v14 = vld [vmem:[#allocation66_spill] sm:$0xff] }
 0x440   :  { %v4676_v21 = vmul.f32 %v5538_v23, %v4280_v46  ;;  %v4684_v32 = vmul.f32 %v5540_v12, %v4280_v46  ;;  %v5550_v31 = vpack.c.bf16 %v4314_v17, %v4335_v37  ;;  %v1693_v26 = vmul.f32 %v5551_v14, %v4270_v18  ;;  %v5553_v14 = vld [vmem:[#allocation84_spill] sm:$0xff] }
 0x441   :  { %v5552_v12 = vpack.c.bf16 %v4339_v22, %v4350_v10  ;;  %v5554_v22 = vld [vmem:[#allocation70_spill] sm:$0xff]  ;;  %v5555_v17 = vld [vmem:[#allocation88_spill] sm:$0xff] }
 0x442   :  { %1810 = vrot.lane.b32.xlu1 %v5548_v15, %s3280_s2  ;;  %1794 = vrot.lane.b32.xlu0 %v5549_v27, %s3280_s2  ;;  %v4680_v27 = vmul.f32 %v5539_v16, %v4209_v56  ;;  %v4696_v15 = vmul.f32 %v5542_v58, %v4209_v56  ;;  %v4700_v16 = vmul.f32 %v5543_v39, %v4280_v46  ;;  %v5556_v37 = vld [vmem:[#allocation68_spill] sm:$0xff] }
 0x443   :  { %v4716_v58 = vmul.f32 %v5545_v34, %v4280_v46  ;;  %v1762_v39 = vpack.c.bf16 %v4365_v51, %v4361_v63  ;;  %v1708_v10 = vmul.f32 %v5554_v22, %v5553_v14  ;;  %v1754_v23 = vpack.c.bf16 %v5555_v17, %v1693_v26  ;;  %v5557_v46 = vld [vmem:[#allocation69_spill] sm:$0xff]  ;;  %v5558_v63 = vld [vmem:[#allocation67_spill] sm:$0xff]  ;;  %v5559_v22 = vld [vmem:[#allocation74_spill] sm:$0xff] }
 0x444   :  { %v1692_v24 = vmul.f32 %v5556_v37, %v5553_v14  ;;  %v1691_v51 = vmul.f32 %v5558_v63, %v4270_v18  ;;  %v1706_v26 = vmul.f32 %v5559_v22, %v5553_v14  ;;  %v5560_v37 = vld [vmem:[#allocation72_spill] sm:$0xff] }
 0x446   :  { %1808 = vrot.lane.b32.xlu1 %v5550_v31, %s3280_s2  ;;  %1792 = vrot.lane.b32.xlu0 %v5552_v12, %s3280_s2  ;;  %v4712_v31 = vmul.f32 %v5544_v57, %v4209_v56  ;;  %v1707_v57 = vmul.f32 %v5557_v46, %v4270_v18  ;;  %v1753_v17 = vpack.c.bf16 %v1692_v24, %v1691_v51  ;;  %v5564_v24 = vld [vmem:[#allocation76_spill] sm:$0xff] }
 0x447   :  { %v1690_v12 = vmul.f32 %v5560_v37, %v5553_v14  ;;  %v1688_v51 = vmul.f32 %v5564_v24, %v5553_v14 }
 0x448   :  { %v1761_v34 = vpack.c.bf16 %v1708_v10, %v1707_v57  ;;  %v5563_v10 = vld [vmem:[#allocation78_spill] sm:$0xff] }
 0x449   :  { %v1704_v57 = vmul.f32 %v5563_v10, %v5553_v14 }
 0x44a   :  { %1806 = vrot.lane.b32.xlu1 %v1762_v39, %s3280_s2  ;;  %1790 = vrot.lane.b32.xlu0 %v1754_v23, %s3280_s2  ;;  %v5561_v39 = vld [vmem:[#allocation73_spill] sm:$0xff]  ;;  %v5562_v23 = vld [vmem:[#allocation71_spill] sm:$0xff] }
 0x44b   :  { %v1705_v56 = vmul.f32 %v5561_v39, %v4270_v18  ;;  %v1689_v46 = vmul.f32 %v5562_v23, %v4270_v18 }
 0x44d   :  { %v1760_v35 = vpack.c.bf16 %v1706_v26, %v1705_v56  ;;  %v1752_v63 = vpack.c.bf16 %v1690_v12, %v1689_v46  ;;  %v5567_v56 = vld [vmem:[#allocation83_spill] sm:$0xff]  ;;  %v5568_v12 = vld [vmem:[#allocation80_spill] sm:$0xff] }
 0x44e   :  { %1804 = vrot.lane.b32.xlu1 %v1761_v34, %s3280_s2  ;;  %1788 = vrot.lane.b32.xlu0 %v1753_v17, %s3280_s2  ;;  %v5565_v34 = vld [vmem:[#allocation77_spill] sm:$0xff]  ;;  %v5566_v17 = vld [vmem:[#allocation75_spill] sm:$0xff]  ;;  %v1702_v26 = vmul.f32 %v5567_v56, %v5553_v14  ;;  %v1686_v46 = vmul.f32 %v5568_v12, %v5553_v14 }
 0x44f   :  { %v1703_v22 = vmul.f32 %v5565_v34, %v4270_v18  ;;  %v1687_v37 = vmul.f32 %v5566_v17, %v4270_v18 }
 0x451   :  { %v1759_v39 = vpack.c.bf16 %v1704_v57, %v1703_v22  ;;  %v1751_v23 = vpack.c.bf16 %v1688_v51, %v1687_v37 }
 0x452   :  { %1802 = vrot.lane.b32.xlu1 %v1760_v35, %s3280_s2  ;;  %1786 = vrot.lane.b32.xlu0 %v1752_v63, %s3280_s2  ;;  %v5569_v35 = vld [vmem:[#allocation82_spill] sm:$0xff]  ;;  %v5570_v63 = vld [vmem:[#allocation79_spill] sm:$0xff] }
 0x453   :  { %v1701_v10 = vmul.f32 %v5569_v35, %v4270_v18  ;;  %v1685_v24 = vmul.f32 %v5570_v63, %v4270_v18 }
 0x455   :  { %v1758_v34 = vpack.c.bf16 %v1702_v26, %v1701_v10  ;;  %v1750_v17 = vpack.c.bf16 %v1686_v46, %v1685_v24 }
 0x456   :  { %1800 = vrot.lane.b32.xlu1 %v1759_v39, %s3280_s2  ;;  %1784 = vrot.lane.b32.xlu0 %v1751_v23, %s3280_s2 }
 0x45a   :  { %1798 = vrot.lane.b32.xlu1 %v1758_v34, %s3280_s2  ;;  %1782 = vrot.lane.b32.xlu0 %v1750_v17, %s3280_s2 }
 0x490   :  { %v1434_v57 = vpop.permute.xlu1 %1433  ;;  %v1418_v51 = vpop.permute.xlu0 %1417 }
 0x491   :  { %3140 = vmatprep.subr.msk.bf16.mxu0 %vm5494_vm9, %v1434_v57  ;;  %v1460_v14 = vsel %vm5571_vm5, %v1418_v51, 0  ;;  %vm5577_vm5 = vmmov %vm5575_vm2 }
 0x492   :  { %2815 = vmatpush3.bf16.xpose.msra.mxu0 %v1460_v14  ;;  %vm5582_vm9 = vmmov %vm5575_vm2 }
 0x494   :  { %v1432_v22 = vpop.permute.xlu1 %1431  ;;  %v1416_v37 = vpop.permute.xlu0 %1415 }
 0x495   :  { %3141 = vmatprep.subr.msk.bf16.mxu0 %vm5572_vm3, %v1432_v22  ;;  %v1457_v39 = vsel %vm5573_vm4, %v1416_v37, 0  ;;  %vm5578_vm3 = vmmov %vm5575_vm2 }
 0x496   :  { %vm5579_vm4 = vmmov %vm5575_vm2 }
 0x498   :  { %v1430_v18 = vpop.permute.xlu1 %1429  ;;  %v1414_v56 = vpop.permute.xlu0 %1413 }
 0x499   :  { %v1454_v26 = vsel %vm5575_vm2, %v1414_v56, 0 }
 0x49a   :  { %2817 = vmatpush3.bf16.xpose.msra.mxu0 %v1457_v39 }
 0x49b   :  { %3142 = vmatprep.subr.msk.bf16.mxu0 %vm5574_vm15, %v1430_v18  ;;  %vm5580_vm15 = vmmov %vm5575_vm2 }
 0x49c   :  { %v1428_v23 = vpop.permute.xlu1 %1427  ;;  %v1412_v12 = vpop.permute.xlu0 %1411 }
 0x49d   :  { %v1451_v46 = vsel %vm5577_vm5, %v1412_v12, 0  ;;  %vm5583_vm5 = vmmov %vm5575_vm2 }
 0x4a0   :  { %v1426_v35 = vpop.permute.xlu1 %1425  ;;  %v1410_v10 = vpop.permute.xlu0 %1409 }
 0x4a1   :  { %v1448_v63 = vsel %vm5579_vm4, %v1410_v10, 0  ;;  %vm5585_vm4 = vmmov %vm5575_vm2 }
 0x4a2   :  { %2819 = vmatpush3.bf16.xpose.msra.mxu0 %v1454_v26 }
 0x4a3   :  { %3143 = vmatprep.subr.msk.bf16.mxu0 %vm5576_vm10, %v1428_v23  ;;  %vm5581_vm10 = vmmov %vm5575_vm2  ;;  %v5587_v23 = vld [vmem:[#allocation81_spill] sm:$0xff] }
 0x4a4   :  { %v1424_v24 = vpop.permute.xlu1 %1423  ;;  %v1408_v34 = vpop.permute.xlu0 %1407 }
 0x4a5   :  { %v1445_v17 = vsel %vm5575_vm2, %v1408_v34, 0 }
 0x4a8   :  { %v1422_v57 = vpop.permute.xlu1 %1421  ;;  %v1406_v51 = vpop.permute.xlu0 %1405 }
 0x4a9   :  { %v1442_v14 = vsel %vm5582_vm9, %v1406_v51, 0  ;;  %vm5590_vm9 = vmmov %vm5575_vm2 }
 0x4aa   :  { %2821 = vmatpush3.bf16.xpose.msra.mxu0 %v1451_v46  ;;  %v5588_v46 = vld [vmem:[#allocation85_spill] sm:$0xff] }
 0x4ab   :  { %3144 = vmatprep.subr.msk.bf16.mxu0 %vm5578_vm3, %v1426_v35  ;;  %vm5584_vm3 = vmmov %vm5575_vm2 }
 0x4ac   :  { %v1420_v22 = vpop.permute.xlu1 %1419  ;;  %v1404_v37 = vpop.permute.xlu0 %1403 }
 0x4ad   :  { %v1439_v39 = vsel %vm5584_vm3, %v1404_v37, 0  ;;  %vm5592_vm3 = vmmov %vm5575_vm2 }
 0x4b0   :  { %v1813_v18 = vpop.permute.xlu1 %1812  ;;  %v1797_v56 = vpop.permute.xlu0 %1796 }
 0x4b2   :  { %2823 = vmatpush3.bf16.xpose.msra.mxu0 %v1448_v63 }
 0x4b3   :  { %3145 = vmatprep.subr.msk.bf16.mxu0 %vm5580_vm15, %v1424_v24  ;;  %vm5586_vm15 = vmmov %vm5575_vm2 }
 0x4b4   :  { %v1839_v26 = vsel %vm5586_vm15, %v1797_v56, 0  ;;  %v1811_v12 = vpop.permute.xlu1 %1810  ;;  %v1795_v35 = vpop.permute.xlu0 %1794  ;;  %vm5594_vm15 = vmmov %vm5575_vm2 }
 0x4b8   :  { %v1809_v63 = vpop.permute.xlu1 %1808  ;;  %v1793_v24 = vpop.permute.xlu0 %1792 }
 0x4ba   :  { %2825 = vmatpush3.bf16.xpose.msra.mxu0 %v1445_v17 }
 0x4bb   :  { %3146 = vmatprep.subr.msk.bf16.mxu0 %vm5581_vm10, %v1422_v57  ;;  %vm5589_vm10 = vmmov %vm5575_vm2 }
 0x4bc   :  { %v1807_v17 = vpop.permute.xlu1 %1806  ;;  %v1791_v57 = vpop.permute.xlu0 %1790 }
 0x4bd   :  { %v1830_v51 = vsel %vm5575_vm2, %v1791_v57, 0 }
 0x4c2   :  { %2827 = vmatpush3.bf16.xpose.msra.mxu0 %v1442_v14  ;;  %v1805_v14 = vpop.permute.xlu1 %1804 }
 0x4c3   :  { %3147 = vmatprep.subr.msk.bf16.mxu0 %vm5583_vm5, %v1420_v22  ;;  %vm5591_vm5 = vmmov %vm5575_vm2  ;;  %v1789_v22 = vpop.permute.xlu0 %1788 }
 0x4c4   :  { %v1836_v10 = vsel %vm5591_vm5, %v1795_v35, 0  ;;  %vm5597_vm5 = vmmov %vm5575_vm2 }
 0x4ca   :  { %2829 = vmatpush3.bf16.xpose.msra.mxu0 %v1439_v39  ;;  %v1803_v39 = vpop.permute.xlu1 %1802 }
 0x4cb   :  { %3148 = vmatprep.subr.msk.bf16.mxu0 %vm5585_vm4, %v1813_v18  ;;  %vm5593_vm4 = vmmov %vm5575_vm2  ;;  %v1787_v18 = vpop.permute.xlu0 %1786 }
 0x4cc   :  { %v1833_v34 = vsel %vm5593_vm4, %v1793_v24, 0  ;;  %vm5599_vm4 = vmmov %vm5575_vm2 }
 0x4d1   :  { %2831 = vmatmul.mubr.msk.bf16.vlgmr.msra.gmra.mxu0 %vm5575_vm2, %v5587_v23  ;;  %v1785_v23 = vpop.permute.xlu0 %1784 }
 0x4d2   :  { %2893 = vmatpush3.bf16.xpose.msra.mxu0 %v1839_v26  ;;  %2908 = vmatprep.mubr.msk.bf16.mxu0 %vm5589_vm10, %v5588_v46  ;;  %vm5595_vm10 = vmmov %vm5575_vm2  ;;  %v1801_v26 = vpop.permute.xlu1 %1800 }
 0x4d3   :  { %3149 = vmatprep.subr.msk.bf16.mxu0 %vm5590_vm9, %v1811_v12  ;;  %vm5596_vm9 = vmmov %vm5575_vm2 }
 0x4d4   :  { %v1827_v37 = vsel %vm5596_vm9, %v1789_v22, 0  ;;  %vm5602_vm9 = vmmov %vm5575_vm2 }
 0x4d6   :  { %v1799_v35 = vpop.permute.xlu1 %1798 }
 0x4da   :  { %2895 = vmatpush3.bf16.xpose.msra.mxu0 %v1836_v10  ;;  %v1783_v10 = vpop.permute.xlu0 %1782 }
 0x4db   :  { %3150 = vmatprep.subr.msk.bf16.mxu0 %vm5592_vm3, %v1809_v63  ;;  %vm5598_vm3 = vmmov %vm5575_vm2 }
 0x4dc   :  { %v1824_v56 = vsel %vm5598_vm3, %v1787_v18, 0 }
 0x4e2   :  { %2897 = vmatpush3.bf16.xpose.msra.mxu0 %v1833_v34 }
 0x4e3   :  { %3151 = vmatprep.subr.msk.bf16.mxu0 %vm5594_vm15, %v1807_v17  ;;  %vm5600_vm15 = vmmov %vm5575_vm2 }
 0x4e4   :  { %v1821_v12 = vsel %vm5600_vm15, %v1785_v23, 0 }
 0x4ea   :  { %2899 = vmatpush3.bf16.xpose.msra.mxu0 %v1830_v51 }
 0x4eb   :  { %3152 = vmatprep.subr.msk.bf16.mxu0 %vm5595_vm10, %v1805_v14  ;;  %vm5601_vm10 = vmmov %vm5575_vm2 }
 0x4ec   :  { %v1818_v63 = vsel %vm5601_vm10, %v1783_v10, 0 }
 0x4f2   :  { %2901 = vmatpush3.bf16.xpose.msra.mxu0 %v1827_v37 }
 0x4f3   :  { %3153 = vmatprep.subr.msk.bf16.mxu0 %vm5597_vm5, %v1803_v39 }
 0x4fa   :  { %2903 = vmatpush3.bf16.xpose.msra.mxu0 %v1824_v56 }
 0x4fb   :  { %3154 = vmatprep.subr.msk.bf16.mxu0 %vm5599_vm4, %v1801_v26 }
 0x502   :  { %2905 = vmatpush3.bf16.xpose.msra.mxu0 %v1821_v12 }
 0x503   :  { %3155 = vmatprep.subr.msk.bf16.mxu0 %vm5575_vm2, %v1799_v35 }
 0x50a   :  { %2907 = vmatpush3.bf16.xpose.msra.mxu0 %v1818_v63 }
 0x511   :  { %2909 = vmatmul.mubr.msk.bf16.vlgmr.msra.gmra.mxu0 %vm5602_vm9, %v5588_v46 }
 0x591   :  { %v1520_v24 = vpop.f32.mrf.mxu0 }
 0x593   :  { %v1522_v34 = vpop.f32.mrf.mxu0 }
 0x594   :  { %v1529_v17 = vmax.f32 %v1520_v24, %v1522_v34 }
 0x595   :  { %v1524_v57 = vpop.f32.mrf.mxu0 }
 0x596   :  { %1530 = vmax.xlane.f32.xlu0 %v1529_v17 }
 0x597   :  { %v1526_v51 = vpop.f32.mrf.mxu0 }
 0x598   :  { %v1532_v14 = vmax.f32 %v1524_v57, %v1526_v51 }
 0x59a   :  { %1533 = vmax.xlane.f32.xlu1 %v1532_v14 }
 0x5d1   :  { %v4805_v22 = vpop.f32.mrf.mxu0 }
 0x5d3   :  { %v4807_v37 = vpop.f32.mrf.mxu0 }
 0x5d4   :  { %v1908_v39 = vmax.f32 %v4805_v22, %v4807_v37 }
 0x5d5   :  { %v4811_v18 = vpop.f32.mrf.mxu0 }
 0x5d6   :  { %1909 = vmax.xlane.f32.xlu0 %v1908_v39 }
 0x5d7   :  { %v4813_v56 = vpop.f32.mrf.mxu0 }
 0x5d8   :  { %v1911_v46 = vmax.f32 %v4811_v18, %v4813_v56 }
 0x5da   :  { %1912 = vmax.xlane.f32.xlu0 %v1911_v46  ;;  %v5603_v46 = vld [vmem:[#allocation87_spill] sm:$0xff] }
 0x61f   :  { %v1531_v26 = vpop.xlane.xlu0 %1530 }
 0x620   :  { %v1535_v23 = vsub.f32 %v1520_v24, %v1531_v26  ;;  %v1536_v12 = vsub.f32 %v1522_v34, %v1531_v26  ;;  %v5605_v24 = vpack.c.bf16 %v5603_v46, %v5604_v49  ;;  %v5606_v26 = vld [vmem:[#allocation90_spill] sm:$0xff]  ;;  %v5616_v49 = vld [vmem:[#allocation16_spill] sm:$0xff]  ;;  %v5618_v46 = vld [vmem:[#allocation29_spill] sm:$0xff] }
 0x622   :  { %v1539_v35 = vmul.f32 1.442695, %v1535_v23  ;;  %v1541_v10 = vmul.f32 1.442695, %v1536_v12  ;;  %v5607_v23 = vld [vmem:[#allocation89_spill] sm:$0xff] }
 0x623   :  { %v1534_v63 = vpop.xlane.xlu1 %1533  ;;  %v5608_v12 = vpack.c.bf16 %v5606_v26, %v5607_v23  ;;  %v5621_v23 = vld [vmem:[#allocation25_spill] sm:$0xff] }
 0x624   :  { %3215 = vpow2.f32 %v1539_v35  ;;  %v1537_v17 = vsub.f32 %v1524_v57, %v1534_v63  ;;  %v1538_v14 = vsub.f32 %v1526_v51, %v1534_v63  ;;  %v5609_v51 = vld [vmem:[#allocation92_spill] sm:$0xff]  ;;  %v5612_v35 = vld [vmem:[#allocation21_spill] sm:$0xff] }
 0x625   :  { %3217 = vpow2.f32 %v1541_v10  ;;  %v5613_v10 = vld [vmem:[#allocation20_spill] sm:$0xff] }
 0x626   :  { %v1543_v45 = vmul.f32 1.442695, %v1537_v17  ;;  %v1545_v47 = vmul.f32 1.442695, %v1538_v14  ;;  %v5614_v63 = vpack.c.bf16 %v5612_v35, %v5613_v10  ;;  %v5615_v17 = vld [vmem:[#allocation17_spill] sm:$0xff] }
 0x627   :  { %v5617_v14 = vpack.c.bf16 %v5615_v17, %v5616_v49  ;;  %v5630_v10 = vld [vmem:[#allocation45_spill] sm:$0xff]  ;;  %v5633_v49 = vld [vmem:[#allocation40_spill] sm:$0xff] }
 0x628   :  { %3219 = vpow2.f32 %v1543_v45  ;;  %v5610_v45 = vld [vmem:[#allocation91_spill] sm:$0xff] }
 0x629   :  { %3221 = vpow2.f32 %v1545_v47  ;;  %v5611_v47 = vpack.c.bf16 %v5609_v51, %v5610_v45  ;;  %v5625_v51 = vld [vmem:[#allocation36_spill] sm:$0xff] }
 0x631   :  { %v3216_v39 = vpop.eup %3215 }
 0x632   :  { %v3218_v36 = vpop.eup %3217 }
 0x633   :  { %1611 = vmatprep.mubr.f32.mxu1 %v3218_v36 }
 0x634   :  { %1612 = vmatmul.mubr.f32.vlgmr.msra.gmra.mxu1 %v3216_v39 }
 0x635   :  { %v3220_v2 = vpop.eup %3219  ;;  %2871 = vmatpush3.bf16.msra.mxu1 %v5605_v24  ;;  %v5619_v24 = vld [vmem:[#allocation28_spill] sm:$0xff] }
 0x636   :  { %v3222_v34 = vpop.eup %3221  ;;  %2872 = vmatprep.subr.bf16.mxu1 %v5608_v12  ;;  %v5620_v26 = vpack.c.bf16 %v5618_v46, %v5619_v24  ;;  %v5624_v12 = vld [vmem:[#allocation37_spill] sm:$0xff]  ;;  %v5635_v46 = vpack.c.bf16 %v4495_v13, %v4489_v41  ;;  %v5636_v24 = vpack.c.bf16 %v4503_v28, %v4499_v60  ;;  %v5650_v60 = vld [vmem:[#allocation19_spill] sm:$0xff]  ;;  %v5685_v28 = vld [vmem:[#allocation46_spill] sm:$0xff] }
 0x637   :  { %1616 = vmatprep.mubr.f32.mxu1 %v3222_v34  ;;  %v1623_v57 = vpack.c.bf16 %v3222_v34, %v3218_v36  ;;  %v5622_v36 = vld [vmem:[#allocation24_spill] sm:$0xff]  ;;  %v5626_v45 = vpack.c.bf16 %v5624_v12, %v5625_v51  ;;  %v5655_v12 = vld [vmem:[#allocation14_spill] sm:$0xff] }
 0x638   :  { %1617 = vmatmul.mubr.f32.gmra.mxu1 %v3220_v2  ;;  %v5623_v34 = vpack.c.bf16 %v5621_v23, %v5622_v36  ;;  %v5638_v23 = vpack.c.bf16 %v4530_v1, %v4521_v11  ;;  %v1622_v36 = vpack.c.bf16 %v3220_v2, %v3216_v39  ;;  %v5652_v2 = vld [vmem:[#allocation15_spill] sm:$0xff]  ;;  %v5683_v11 = vld [vmem:[#allocation50_spill] sm:$0xff] }
 0x639   :  { %2873 = vmatpush3.bf16.msra.mxu1 %v5611_v47  ;;  %1672 = vmatprep.mubr.bf16.mxu1 %v1623_v57  ;;  %v5627_v57 = vld [vmem:[#allocation33_spill] sm:$0xff]  ;;  %v5628_v47 = vld [vmem:[#allocation32_spill] sm:$0xff]  ;;  %v5681_v1 = vld [vmem:[#allocation47_spill] sm:$0xff] }
 0x63a   :  { %2874 = vmatprep.subr.bf16.mxu1 %v5614_v63  ;;  %v5629_v35 = vpack.c.bf16 %v5627_v57, %v5628_v47  ;;  %v5631_v63 = vld [vmem:[#allocation44_spill] sm:$0xff] }
 0x63b   :  { %v5632_v17 = vpack.c.bf16 %v5630_v10, %v5631_v63 }
 0x63d   :  { %2875 = vmatpush3.bf16.msra.mxu1 %v5617_v14  ;;  %v5634_v14 = vpack.c.bf16 %v4485_v53, %v5633_v49  ;;  %v5640_v53 = vld [vmem:[#allocation9_spill] sm:$0xff]  ;;  %v5663_v49 = vld [vmem:[#allocation22_spill] sm:$0xff] }
 0x63e   :  { %2876 = vmatprep.subr.bf16.mxu1 %v5620_v26  ;;  %v5637_v26 = vpack.c.bf16 %v4517_v40, %v4513_v5  ;;  %vm5641_vm5 = vnez %v5640_v53  ;;  %v5648_v5 = vld [vmem:[#allocation10_spill] sm:$0xff]  ;;  %vm5664_vm3 = vnez %v5663_v49  ;;  %v5679_v40 = vld [vmem:[#allocation51_spill] sm:$0xff] }
 0x63f   :  { %v5671_v53 = vld [vmem:[#allocation30_spill] sm:$0xff] }
 0x640   :  { %vm5672_vm10 = vnez %v5671_v53 }
 0x641   :  { %2877 = vmatpush3.bf16.msra.mxu1 %v5623_v34  ;;  %v5639_v34 = vmov 1.0  }
 0x642   :  { %2878 = vmatprep.subr.bf16.mxu1 %v5626_v45  ;;  %v5657_v45 = vld [vmem:[#allocation27_spill] sm:$0xff] }
 0x645   :  { %2879 = vmatpush3.bf16.msra.mxu1 %v5629_v35  ;;  %v5659_v35 = vld [vmem:[#allocation23_spill] sm:$0xff] }
 0x646   :  { %2880 = vmatprep.subr.bf16.mxu1 %v5632_v17  ;;  %v5661_v17 = vld [vmem:[#allocation26_spill] sm:$0xff] }
 0x649   :  { %2881 = vmatpush3.bf16.msra.mxu1 %v5634_v14 }
 0x64a   :  { %2882 = vmatprep.subr.bf16.mxu1 %v5635_v46 }
 0x64d   :  { %2883 = vmatpush3.bf16.msra.mxu1 %v5636_v24  ;;  %v5667_v24 = vld [vmem:[#allocation31_spill] sm:$0xff] }
 0x64e   :  { %2884 = vmatprep.subr.bf16.mxu1 %v5637_v26  ;;  %vm5668_vm15 = vnez %v5667_v24 }
 0x651   :  { %2885 = vmatpush3.bf16.msra.mxu1 %v5638_v23 }
 0x652   :  { %2910 = vmatprep.subr.msk.mxu1 %vm5641_vm5, %v5639_v34 }
 0x654   :  { %1673 = vmatmul.mubr.bf16.vlgmr.msra.gmra.mxu1 %v1622_v36  ;;  %v5669_v36 = vld [vmem:[#allocation34_spill] sm:$0xff] }
 0x655   :  { %2911 = vmatpush3.msk.msra.mxu1 %vm3581_vm8, %v5639_v34  ;;  %vm5649_vm8 = vnez %v5648_v5  ;;  %vm5670_vm2 = vnez %v5669_v36  ;;  %v5687_v5 = vld [vmem:[#allocation59_spill] sm:$0xff] }
 0x656   :  { %2912 = vmatprep.subr.msk.mxu1 %vm3576_vm7, %v5639_v34  ;;  %vm5651_vm7 = vnez %v5650_v60 }
 0x657   :  { %2913 = vmatpush3.msk.msra.mxu1 %vm3571_vm0, %v5639_v34  ;;  %vm5653_vm0 = vnez %v5652_v2  ;;  %v5689_v2 = vld [vmem:[#allocation55_spill] sm:$0xff] }
 0x658   :  { %2914 = vmatprep.subr.msk.mxu1 %vm3642_vm13, %v5639_v34  ;;  %vm5660_vm13 = vnez %v5659_v35 }
 0x659   :  { %2915 = vmatpush3.msk.msra.mxu1 %vm3618_vm11, %v5639_v34  ;;  %vm5656_vm11 = vnez %v5655_v12  ;;  %v5691_v12 = vld [vmem:[#allocation58_spill] sm:$0xff] }
 0x65a   :  { %2916 = vmatprep.subr.msk.mxu1 %vm3637_vm12, %v5639_v34  ;;  %vm5658_vm12 = vnez %v5657_v45  ;;  %v5695_v45 = vpack.c.bf16 %v4540_v19, %v4534_v9  ;;  %v5699_v9 = vpack.c.bf16 %v4588_v25, %v4578_v3  ;;  %v5703_v19 = vpack.c.bf16 %v4632_v4, %v4622_v59  ;;  %v3201_v4 = vld [vmem:[%s5138_s3 + $0x8] sm:$0xff]  }
 0x65b   :  { %2917 = vmatpush3.msk.msra.mxu1 %vm5649_vm8, %v5639_v34  ;;  %vm5680_vm8 = vnez %v5679_v40  ;;  %v5707_v3 = vpack.c.bf16 %v4676_v21, %v4670_v30  ;;  %v5708_v25 = vpack.c.bf16 %v4684_v32, %v4680_v27 }
 0x65c   :  { %2918 = vmatprep.subr.msk.mxu1 %vm5651_vm7, %v5639_v34  ;;  %vm5682_vm7 = vnez %v5681_v1 }
 0x65d   :  { %2919 = vmatpush3.msk.msra.mxu1 %vm5653_vm0, %v5639_v34  ;;  %vm5684_vm0 = vnez %v5683_v11 }
 0x65e   :  { %2920 = vmatprep.subr.msk.mxu1 %vm3693_vm1, %v5639_v34  ;;  %vm5662_vm1 = vnez %v5661_v17 }
 0x65f   :  { %2921 = vmatpush3.msk.msra.mxu1 %vm5656_vm11, %v5639_v34  ;;  %v1910_v51 = vpop.xlane.xlu0 %1909  ;;  %vm5686_vm11 = vnez %v5685_v28 }
 0x660   :  { %2922 = vmatprep.subr.msk.mxu1 %vm5658_vm12, %v5639_v34  ;;  %v1914_v57 = vsub.f32 %v4805_v22, %v1910_v51  ;;  %v1915_v47 = vsub.f32 %v4807_v37, %v1910_v51  ;;  %v5665_v22 = vld [vmem:[#allocation35_spill] sm:$0xff]  ;;  %vm5692_vm12 = vnez %v5691_v12  ;;  %v5693_v51 = vld [vmem:[#allocation54_spill] sm:$0xff] }
 0x661   :  { %2923 = vmatpush3.msk.msra.mxu1 %vm5660_vm13, %v5639_v34  ;;  %vm5666_vm4 = vnez %v5665_v22  ;;  %vm5694_vm13 = vnez %v5693_v51 }
 0x662   :  { %v1918_v10 = vmul.f32 1.442695, %v1914_v57  ;;  %v1920_v63 = vmul.f32 1.442695, %v1915_v47  ;;  %2924 = vmatprep.subr.msk.mxu1 %vm5662_vm1, %v5639_v34  ;;  %v5696_v47 = vpack.c.bf16 %v4548_v33, %v4544_v62  ;;  %v5700_v62 = vpack.c.bf16 %v4596_v6, %v4592_v55 }
 0x663   :  { %2925 = vmatpush3.msk.msra.mxu1 %vm5664_vm3, %v5639_v34  ;;  %v1913_v14 = vpop.xlane.xlu0 %1912  ;;  %v5701_v33 = vpack.c.bf16 %v4606_v29, %v4602_v43  ;;  %v5709_v55 = vpack.c.bf16 %v4700_v16, %v4696_v15  ;;  %v5710_v6 = vpack.c.bf16 %v4716_v58, %v4712_v31  ;;  %v3199_v29 = vld [vmem:[%s5138_s3 + $0x18] sm:$0xff]   ;;  %vm5711_vm1 = vcmask 523264  }
 0x664   :  { %3223 = vpow2.f32 %v1918_v10  ;;  %2926 = vmatprep.subr.msk.mxu1 %vm5666_vm4, %v5639_v34  ;;  %v1916_v37 = vsub.f32 %v4811_v18, %v1913_v14  ;;  %v1917_v46 = vsub.f32 %v4813_v56, %v1913_v14  ;;  %v5673_v18 = vld [vmem:[#allocation43_spill] sm:$0xff]  ;;  %v5697_v10 = vpack.c.bf16 %v4558_v7, %v4554_v48  ;;  %3096 = vmatprep.subr.bf16.mxu0 %v3199_v29  ;;  %vm5712_vm3 = vmmov %vm5711_vm1 }
 0x665   :  { %3225 = vpow2.f32 %v1920_v63  ;;  %2927 = vmatpush3.msk.msra.mxu1 %vm5668_vm15, %v5639_v34  ;;  %vm5674_vm9 = vnez %v5673_v18  ;;  %v5675_v56 = vld [vmem:[#allocation39_spill] sm:$0xff]  ;;  %v5702_v7 = vpack.c.bf16 %v4618_v54, %v4610_v0  ;;  %v5705_v48 = vpack.c.bf16 %v4654_v38, %v4650_v52  ;;  %3097 = vmatpush3.bf16.msra.mxu0 %v3199_v29  ;;  %v3202_v54 = vld [vmem:[%s5138_s3] sm:$0xff]   ;;  %vm5716_vm4 = vmmov %vm5711_vm1 }
 0x666   :  { %v1922_v26 = vmul.f32 1.442695, %v1916_v37  ;;  %v1924_v23 = vmul.f32 1.442695, %v1917_v46  ;;  %2928 = vmatprep.subr.msk.mxu1 %vm5670_vm2, %v5639_v34  ;;  %vm5676_vm5 = vnez %v5675_v56  ;;  %v3200_v0 = vld [vmem:[%s5138_s3 + $0x10] sm:$0xff]   ;;  %vm5721_vm15 = vmmov %vm5711_vm1 }
 0x667   :  { %2929 = vmatpush3.msk.msra.mxu1 %vm5672_vm10, %v5639_v34  ;;  %3098 = vmatprep.subr.bf16.mxu0 %v3200_v0  ;;  %vm5722_vm2 = vmmov %vm5711_vm1 }
 0x668   :  { %3227 = vpow2.f32 %v1922_v26  ;;  %2930 = vmatprep.subr.msk.mxu1 %vm5674_vm9, %v5639_v34  ;;  %vm5725_vm10 = vmmov %vm5711_vm1 }
 0x669   :  { %3229 = vpow2.f32 %v1924_v23  ;;  %2931 = vmatpush3.msk.msra.mxu1 %vm5676_vm5, %v5639_v34  ;;  %3099 = vmatpush3.bf16.msra.mxu0 %v3200_v0  ;;  %vm5726_vm9 = vmmov %vm5711_vm1 }
 0x66a   :  { %2932 = vmatprep.subr.msk.mxu1 %vm5471_vm6, %v5639_v34  ;;  %vm5688_vm6 = vnez %v5687_v5  ;;  %3100 = vmatprep.subr.bf16.mxu0 %v3201_v4  ;;  %v5713_v5 = vld [vmem:[#allocation5_spill] sm:$0xff]  ;;  %vm5727_vm5 = vmmov %vm5711_vm1 }
 0x66b   :  { %2933 = vmatpush3.msk.msra.mxu1 %vm5472_vm14, %v5639_v34  ;;  %vm5690_vm14 = vnez %v5689_v2  ;;  %v5028_v2 = vld [vmem:[%s5141_s6] sm:$0xff] }
 0x66c   :  { %2934 = vmatprep.subr.msk.mxu1 %vm5680_vm8, %v5639_v34  ;;  %vm5728_vm8 = vmmov %vm5711_vm1 }
 0x66d   :  { %2935 = vmatpush3.msk.msra.mxu1 %vm5682_vm7, %v5639_v34  ;;  %3101 = vmatpush3.bf16.msra.mxu0 %v3201_v4  ;;  %vm5729_vm7 = vmmov %vm5711_vm1 }
 0x66e   :  { %2936 = vmatprep.subr.msk.mxu1 %vm5684_vm0, %v5639_v34  ;;  %3102 = vmatprep.subr.bf16.mxu0 %v3202_v54  ;;  %vm5730_vm0 = vmmov %vm5711_vm1 }
 0x66f   :  { %2937 = vmatpush3.msk.msra.mxu1 %vm5686_vm11, %v5639_v34  ;;  %vm5731_vm11 = vmmov %vm5730_vm0 }
 0x670   :  { %2938 = vmatprep.subr.msk.mxu1 %vm5688_vm6, %v5639_v34  ;;  %vm5732_vm6 = vmmov %vm5730_vm0 }
 0x671   :  { %v3224_v60 = vpop.eup %3223  ;;  %2939 = vmatpush3.msk.msra.mxu1 %vm5690_vm14, %v5639_v34  ;;  %3103 = vmatpush3.bf16.msra.mxu0 %v3202_v54  ;;  %vm5733_vm14 = vmmov %vm5730_vm0 }
 0x672   :  { %v3226_v39 = vpop.eup %3225  ;;  %2940 = vmatprep.subr.msk.mxu1 %vm5692_vm12, %v5639_v34  ;;  %vm5734_vm12 = vmmov %vm5730_vm0 }
 0x673   :  { %2941 = vmatpush3.msk.msra.mxu1 %vm5694_vm13, %v5639_v34  ;;  %1990 = vmatprep.mubr.f32.mxu1 %v3226_v39  ;;  %v5698_v34 = vpack.c.bf16 %v4574_v61, %v4562_v50  ;;  %v5704_v61 = vpack.c.bf16 %v4640_v8, %v4636_v42  ;;  %v5706_v50 = vpack.c.bf16 %v4666_v20, %v4658_v44  ;;  %vm5735_vm13 = vmmov %vm5730_vm0 }
 0x674   :  { %2948 = vmatprep.subr.bf16.mxu1 %v5695_v45  ;;  %1991 = vmatmul.mubr.f32.vlgmr.msra.gmra.mxu1 %v3224_v60 }
 0x675   :  { %v3228_v57 = vpop.eup %3227  ;;  %2949 = vmatpush3.bf16.msra.mxu1 %v5696_v47 }
 0x676   :  { %v3230_v35 = vpop.eup %3229  ;;  %2950 = vmatprep.subr.bf16.mxu1 %v5697_v10  ;;  %v2001_v43 = vpack.c.bf16 %v3228_v57, %v3224_v60  ;;  %v2076_v60 = vsub.s32 3, %v5713_v5 }
 0x677   :  { %1995 = vmatprep.mubr.f32.mxu1 %v3230_v35  ;;  %v2002_v63 = vpack.c.bf16 %v3230_v35, %v3226_v39  ;;  %v5714_v35 = vld [vmem:[#allocation62_spill] sm:$0xff] }
 0x678   :  { %1996 = vmatmul.mubr.f32.gmra.mxu1 %v3228_v57  ;;  %v2077_v39 = vrot.slane %v5028_v2, %v2076_v60  ;;  %v5715_v10 = vmax.f32 %v5714_v35, 0.0 }
 0x679   :  { %2951 = vmatpush3.bf16.msra.mxu1 %v5698_v34  ;;  %2051 = vmatprep.mubr.bf16.mxu1 %v2002_v63 }
 0x67a   :  { %2952 = vmatprep.subr.bf16.mxu1 %v5699_v9 }
 0x67d   :  { %2953 = vmatpush3.bf16.msra.mxu1 %v5700_v62 }
 0x67e   :  { %2954 = vmatprep.subr.bf16.mxu1 %v5701_v33 }
 0x681   :  { %2955 = vmatpush3.bf16.msra.mxu1 %v5702_v7  ;;  %v5717_v7 = vld [vmem:[#allocation65_spill] sm:$0xff] }
 0x682   :  { %2956 = vmatprep.subr.bf16.mxu1 %v5703_v19  ;;  %v5718_v19 = vmax.f32 %v5717_v7, 0.0 }
 0x685   :  { %2957 = vmatpush3.bf16.msra.mxu1 %v5704_v61 }
 0x686   :  { %2958 = vmatprep.subr.bf16.mxu1 %v5705_v48  ;;  %v5719_v48 = vld [vmem:[#allocation63_spill] sm:$0xff] }
 0x689   :  { %2959 = vmatpush3.bf16.msra.mxu1 %v5706_v50  ;;  %v5720_v50 = vmax.f32 %v5719_v48, 0.0 }
 0x68a   :  { %2960 = vmatprep.subr.bf16.mxu1 %v5707_v3 }
 0x68d   :  { %2961 = vmatpush3.bf16.msra.mxu1 %v5708_v25 }
 0x68e   :  { %2962 = vmatprep.subr.bf16.mxu1 %v5709_v55 }
 0x691   :  { %2963 = vmatpush3.bf16.msra.mxu1 %v5710_v6  ;;  %v5723_v6 = vld [vmem:[#allocation64_spill] sm:$0xff] }
 0x694   :  { %2052 = vmatmul.mubr.bf16.vlgmr.msra.gmra.mxu1 %v2001_v43  ;;  %v5724_v43 = vmax.f32 %v5723_v6, 0.0 }
 0x6f4   :  { %v2864_v59 = vpop.f32.mrf.mxu1 }
 0x6f6   :  { %v2865_v42 = vpop.f32.mrf.mxu1 }
 0x6f7   :  { %v2866_v38 = vadd.f32 %v2865_v42, %v2864_v59 }
 0x6f8   :  { %v2867_v8 = vpop.f32.mrf.mxu1 }
 0x6f9   :  { %3231 = vrcp.f32 %v2866_v38 }
 0x6fa   :  { %v2868_v52 = vpop.f32.mrf.mxu1 }
 0x6fb   :  { %v2869_v44 = vadd.f32 %v2868_v52, %v2867_v8 }
 0x6fd   :  { %3233 = vrcp.f32 %v2869_v44 }
 0x706   :  { %v3232_v27 = vpop.eup %3231 }
 0x70a   :  { %v3234_v31 = vpop.eup %3233 }
 0x714   :  { %v2886_v15 = vpop.f32.mrf.mxu1 }
 0x716   :  { %v2887_v32 = vpop.f32.mrf.mxu1 }
 0x717   :  { %v2888_v30 = vadd.f32 %v2887_v32, %v2886_v15 }
 0x718   :  { %v2889_v20 = vpop.f32.mrf.mxu1 }
 0x719   :  { %v1683_v58 = vmul.f32 %v3232_v27, %v2888_v30 }
 0x71a   :  { %v2890_v21 = vpop.f32.mrf.mxu1 }
 0x71b   :  { %v2891_v16 = vadd.f32 %v2890_v21, %v2889_v20 }
 0x71d   :  { %v1684_v17 = vmul.f32 %v3234_v31, %v2891_v16 }
 0x71f   :  { %v2072_v49 = vpack.c.bf16 %v1684_v17, %v1683_v58 }
 0x721   :  { %3104 = vmatprep.mubr.msk.bf16.mxu0 %vm5711_vm1, %v2072_v49  ;;  %vm5736_vm1 = vmmov %vm5730_vm0 }
 0x734   :  { %v2942_v14 = vpop.f32.mrf.mxu1 }
 0x736   :  { %v2943_v22 = vpop.f32.mrf.mxu1 }
 0x737   :  { %v2944_v24 = vadd.f32 %v2943_v22, %v2942_v14  ;;  %v3203_v22 = vld [vmem:[%s5139_s4 + $0x18] sm:$0xff]  }
 0x738   :  { %v2945_v37 = vpop.f32.mrf.mxu1  ;;  %3108 = vmatprep.subr.bf16.mxu1 %v3203_v22 }
 0x739   :  { %3235 = vrcp.f32 %v2944_v24  ;;  %3109 = vmatpush3.bf16.msra.mxu1 %v3203_v22  ;;  %v3206_v24 = vld [vmem:[%s5139_s4] sm:$0xff]   ;;  %v2347_v22 = vsub.s32 7, %v5713_v5 }
 0x73a   :  { %v2946_v46 = vpop.f32.mrf.mxu1 }
 0x73b   :  { %v2947_v26 = vadd.f32 %v2946_v46, %v2945_v37  ;;  %v3204_v37 = vld [vmem:[%s5139_s4 + $0x10] sm:$0xff]   ;;  %v3205_v46 = vld [vmem:[%s5139_s4 + $0x8] sm:$0xff]  }
 0x73c   :  { %3110 = vmatprep.subr.bf16.mxu1 %v3204_v37 }
 0x73d   :  { %3237 = vrcp.f32 %v2947_v26  ;;  %3111 = vmatpush3.bf16.msra.mxu1 %v3204_v37  ;;  %v3207_v26 = vld [vmem:[%s5140_s5 + $0x38] sm:$0xff]   ;;  %v2348_v37 = vrot.slane %v5028_v2, %v2347_v22 }
 0x73e   :  { %3112 = vmatprep.subr.bf16.mxu1 %v3205_v46  ;;  %3120 = vmatprep.subr.bf16.mxu0 %v3207_v26 }
 0x741   :  { %3113 = vmatpush3.bf16.msra.mxu1 %v3205_v46 }
 0x742   :  { %3114 = vmatprep.subr.bf16.mxu1 %v3206_v24 }
 0x745   :  { %3115 = vmatpush3.bf16.msra.mxu1 %v3206_v24 }
 0x746   :  { %v3236_v41 = vpop.eup %3235 }
 0x74a   :  { %v3238_v40 = vpop.eup %3237 }
 0x754   :  { %v2964_v23 = vpop.f32.mrf.mxu1 }
 0x756   :  { %v2965_v36 = vpop.f32.mrf.mxu1 }
 0x757   :  { %v2966_v18 = vadd.f32 %v2965_v36, %v2964_v23  ;;  %v3208_v23 = vld [vmem:[%s5140_s5 + $0x30] sm:$0xff]   ;;  %v3209_v36 = vld [vmem:[%s5140_s5 + $0x28] sm:$0xff]  }
 0x758   :  { %v2967_v53 = vpop.f32.mrf.mxu1 }
 0x759   :  { %v2062_v1 = vmul.f32 %v3236_v41, %v2966_v18  ;;  %v3211_v18 = vld [vmem:[%s5140_s5 + $0x18] sm:$0xff]  }
 0x75a   :  { %v2968_v56 = vpop.f32.mrf.mxu1 }
 0x75b   :  { %v2969_v13 = vadd.f32 %v2968_v56, %v2967_v53  ;;  %v3210_v53 = vld [vmem:[%s5140_s5 + $0x20] sm:$0xff]  }
 0x75d   :  { %v2063_v11 = vmul.f32 %v3238_v40, %v2969_v13 }
 0x75f   :  { %v2073_v28 = vpack.c.bf16 %v2063_v11, %v2062_v1 }
 0x761   :  { %3105 = vmatmul.mubr.msk.bf16.vlgmr.msra.gmra.mxu0 %vm5712_vm3, %v2073_v28  ;;  %vm5737_vm3 = vmmov %vm5730_vm0 }
 0x762   :  { %3121 = vmatpush3.bf16.msra.mxu0 %v3207_v26 }
 0x763   :  { %3122 = vmatprep.subr.bf16.mxu0 %v3208_v23 }
 0x766   :  { %3123 = vmatpush3.bf16.msra.mxu0 %v3208_v23 }
 0x767   :  { %3124 = vmatprep.subr.bf16.mxu0 %v3209_v36 }
 0x76a   :  { %3125 = vmatpush3.bf16.msra.mxu0 %v3209_v36 }
 0x76b   :  { %3126 = vmatprep.subr.bf16.mxu0 %v3210_v53 }
 0x76e   :  { %3127 = vmatpush3.bf16.msra.mxu0 %v3210_v53 }
 0x76f   :  { %3128 = vmatprep.subr.bf16.mxu0 %v3211_v18 }
 0x772   :  { %3129 = vmatpush3.bf16.msra.mxu0 %v3211_v18 }
 0x821   :  { %v3106_v12 = vpop.f32.mrf.mxu0 }
 0x822   :  { %v2151_v45 = vadd.f32 %v3106_v12, %v2077_v39 }
 0x823   :  { %v2142_v51 = vpop.f32.mrf.mxu0 }
 0x824   :  { %v2143_v57 = vadd.f32 %v2142_v51, %v2077_v39  ;;  %v2159_v61 = vadd.f32 %v2151_v45, %v5718_v19 }
 0x825   :  { %v3107_v47 = vpop.f32.mrf.mxu0 }
 0x826   :  { %v2157_v63 = vadd.f32 %v2143_v57, %v5715_v10  ;;  %v2154_v9 = vadd.f32 %v3107_v47, %v2077_v39  ;;  %v2167_v55 = vsel %vm5722_vm2, %v2159_v61, 0.0  ;;  %v2216_v57 = vsub.s32 4, %v5713_v5  ;;  %vm5742_vm2 = vmmov %vm5730_vm0 }
 0x827   :  { %v2145_v34 = vpop.f32.mrf.mxu0 }
 0x828   :  { %v2146_v62 = vadd.f32 %v2145_v34, %v2077_v39  ;;  %v2161_v33 = vsel %vm5716_vm4, %v2157_v63, 0.0  ;;  %v2160_v29 = vadd.f32 %v2154_v9, %v5724_v43  ;;  %v2217_v10 = vrot.slane %v5028_v2, %v2216_v57  ;;  %vm5738_vm4 = vmmov %vm5730_vm0 }
 0x829   :  { %2162 = vadd.xlane.f32.xlu1 %v2161_v33 }
 0x82a   :  { %v2158_v3 = vadd.f32 %v2146_v62, %v5720_v50  ;;  %v2170_v0 = vsel %vm5725_vm10, %v2160_v29, 0.0  ;;  %vm5743_vm10 = vmmov %vm5730_vm0 }
 0x82c   :  { %v2164_v25 = vsel %vm5721_vm15, %v2158_v3, 0.0  ;;  %vm5739_vm15 = vmmov %vm5730_vm0 }
 0x82d   :  { %2165 = vadd.xlane.f32.xlu0 %v2164_v25  ;;  %2168 = vadd.xlane.f32.xlu1 %v2167_v55 }
 0x831   :  { %2171 = vadd.xlane.f32.xlu0 %v2170_v0 }
 0x8b2   :  { %v2163_v4 = vpop.xlane.xlu1 %2162 }
 0x8b3   :  { %v2174_v54 = vmul.f32 0.015625, %v2163_v4 }
 0x8b5   :  { %v5043_v59 = vsub.f32 %v2157_v63, %v2174_v54  ;;  %v2224_v63 = vsub.s32 5, %v5713_v5  ;;  %v3212_v54 = vld [vmem:[%s5140_s5 + $0x10] sm:$0xff]  }
 0x8b6   :  { %v2166_v42 = vpop.xlane.xlu0 %2165  ;;  %v2169_v8 = vpop.xlane.xlu1 %2168  ;;  %3130 = vmatprep.subr.bf16.mxu0 %v3212_v54 }
 0x8b7   :  { %v2175_v52 = vmul.f32 0.015625, %v2166_v42  ;;  %v2176_v38 = vmul.f32 0.015625, %v2169_v8  ;;  %v2182_v44 = vmul.f32 %v5043_v59, %v5043_v59  ;;  %v2225_v7 = vrot.slane %v5028_v2, %v2224_v63  ;;  %3131 = vmatpush3.bf16.msra.mxu0 %v3212_v54  ;;  %v3214_v42 = vld [vmem:[%s5140_s5] sm:$0xff]  }
 0x8b8   :  { %v2242_v8 = vsub.s32 6, %v5713_v5 }
 0x8b9   :  { %v5047_v15 = vsub.f32 %v2158_v3, %v2175_v52  ;;  %v5049_v32 = vsub.f32 %v2159_v61, %v2176_v38  ;;  %v2186_v20 = vsel %vm5726_vm9, %v2182_v44, 0.0  ;;  %vm5744_vm9 = vmmov %vm5730_vm0 }
 0x8ba   :  { %v2172_v30 = vpop.xlane.xlu0 %2171  ;;  %2187 = vadd.xlane.f32.xlu1 %v2186_v20  ;;  %v2243_v38 = vrot.slane %v5028_v2, %v2242_v8 }
 0x8bb   :  { %v2177_v21 = vmul.f32 0.015625, %v2172_v30  ;;  %v2183_v27 = vmul.f32 %v5047_v15, %v5047_v15  ;;  %v2184_v16 = vmul.f32 %v5049_v32, %v5049_v32 }
 0x8bd   :  { %v5056_v31 = vsub.f32 %v2160_v29, %v2177_v21  ;;  %v2189_v58 = vsel %vm5727_vm5, %v2183_v27, 0.0  ;;  %v2192_v17 = vsel %vm5728_vm8, %v2184_v16, 0.0  ;;  %vm5745_vm5 = vmmov %vm5730_vm0 }
 0x8be   :  { %2190 = vadd.xlane.f32.xlu0 %v2189_v58  ;;  %2193 = vadd.xlane.f32.xlu1 %v2192_v17 }
 0x8bf   :  { %v2185_v49 = vmul.f32 %v5056_v31, %v5056_v31 }
 0x8c1   :  { %v2195_v14 = vsel %vm5729_vm7, %v2185_v49, 0.0 }
 0x8c2   :  { %2196 = vadd.xlane.f32.xlu0 %v2195_v14 }
 0x943   :  { %v2188_v56 = vpop.xlane.xlu1 %2187 }
 0x944   :  { %v2198_v41 = vmul.f32 0.015625, %v2188_v56 }
 0x946   :  { %v2202_v13 = vadd.f32 1e-05, %v2198_v41 }
 0x947   :  { %v2191_v40 = vpop.xlane.xlu0 %2190  ;;  %v2194_v1 = vpop.xlane.xlu1 %2193 }
 0x948   :  { %3239 = vrsqrt.f32 %v2202_v13  ;;  %v2199_v11 = vmul.f32 0.015625, %v2191_v40  ;;  %v2200_v28 = vmul.f32 0.015625, %v2194_v1 }
 0x94a   :  { %v2203_v60 = vadd.f32 1e-05, %v2199_v11  ;;  %v2204_v39 = vadd.f32 1e-05, %v2200_v28 }
 0x94b   :  { %v2197_v12 = vpop.xlane.xlu0 %2196 }
 0x94c   :  { %3241 = vrsqrt.f32 %v2203_v60  ;;  %v2201_v51 = vmul.f32 0.015625, %v2197_v12 }
 0x94d   :  { %3243 = vrsqrt.f32 %v2204_v39 }
 0x94e   :  { %v2205_v45 = vadd.f32 1e-05, %v2201_v51 }
 0x950   :  { %3245 = vrsqrt.f32 %v2205_v45 }
 0x955   :  { %v3240_v47 = vpop.eup %3239 }
 0x956   :  { %v2210_v35 = vmul.f32 %v3240_v47, %v5043_v59  ;;  %v3213_v59 = vld [vmem:[%s5140_s5 + $0x8] sm:$0xff]  }
 0x957   :  { %3132 = vmatprep.subr.bf16.mxu0 %v3213_v59 }
 0x958   :  { %v2218_v33 = vmul.f32 %v2217_v10, %v2210_v35  ;;  %3133 = vmatpush3.bf16.msra.mxu0 %v3213_v59 }
 0x959   :  { %v3242_v34 = vpop.eup %3241  ;;  %3134 = vmatprep.subr.bf16.mxu0 %v3214_v42 }
 0x95a   :  { %v3244_v9 = vpop.eup %3243  ;;  %v2211_v62 = vmul.f32 %v3242_v34, %v5047_v15  ;;  %v2226_v3 = vadd.f32 %v2225_v7, %v2218_v33 }
 0x95b   :  { %v2212_v19 = vmul.f32 %v3244_v9, %v5049_v32 }
 0x95c   :  { %v2219_v61 = vmul.f32 %v2217_v10, %v2211_v62  ;;  %3135 = vmatpush3.bf16.msra.mxu0 %v3214_v42 }
 0x95d   :  { %v3246_v48 = vpop.eup %3245  ;;  %v2220_v55 = vmul.f32 %v2217_v10, %v2212_v19 }
 0x95e   :  { %v2213_v50 = vmul.f32 %v3246_v48, %v5056_v31  ;;  %v2227_v25 = vadd.f32 %v2225_v7, %v2219_v61 }
 0x95f   :  { %v2228_v29 = vadd.f32 %v2225_v7, %v2220_v55 }
 0x960   :  { %v2238_v6 = vpack.c.bf16 %v2227_v25, %v2226_v3  ;;  %v2221_v43 = vmul.f32 %v2217_v10, %v2213_v50 }
 0x962   :  { %3116 = vmatprep.mubr.msk.bf16.mxu1 %vm5730_vm0, %v2238_v6  ;;  %v2229_v0 = vadd.f32 %v2225_v7, %v2221_v43 }
 0x964   :  { %v2239_v4 = vpack.c.bf16 %v2229_v0, %v2228_v29 }
 0x966   :  { %3117 = vmatmul.mubr.msk.bf16.vlgmr.msra.gmra.mxu1 %vm5731_vm11, %v2239_v4 }
 0xa26   :  { %v3118_v52 = vpop.f32.mrf.mxu1 }
 0xa27   :  { %v2317_v30 = vadd.f32 %v3118_v52, %v2243_v38 }
 0xa28   :  { %v2308_v44 = vpop.f32.mrf.mxu1 }
 0xa29   :  { %v2309_v32 = vadd.f32 %v2308_v44, %v2243_v38  ;;  %v2325_v17 = vmax.f32 %v2317_v30, 0.0  ;;  %v30_v44 = vld [vmem:[%s5141_s6 + $0x10] sm:$0x3]  ;;  %v5741_v30 = vsub.s32 1, %v5713_v5  ;;  %s3282_s6 = smov [#allocation2]  }
 0xa2a   :  { %v3119_v15 = vpop.f32.mrf.mxu1  ;;  %s2527_s1 = sshll.u32 %s3282_s6, 4  ;;  %s2528_s1 = int_to_ptr.vmem [resolvable:$true] %s2527_s1 }
 0xa2b   :  { %v2320_v20 = vadd.f32 %v3119_v15, %v2243_v38  ;;  %v2323_v31 = vmax.f32 %v2309_v32, 0.0  ;;  %v5740_v15 = vsub.s32 0, %v5713_v5  ;;  %s3256_s3 = scalar_lea.vmem %s2528_s1, 512  ;;  %p3261_p1 = scmp.lt.s32.totalorder %s2528_s1, %s2528_s1 }
 0xa2c   :  { %v2311_v21 = vpop.f32.mrf.mxu1  ;;  %p3257_p0 = scmp.ne.s32.totalorder %s2528_s1, %s3256_s3  ;;  %p3262_p2 = scmp.lt.s32.totalorder %s3256_s3, %s3256_s3 }
 0xa2d   :  { %v2312_v27 = vadd.f32 %v2311_v21, %v2243_v38  ;;  %v2326_v16 = vmax.f32 %v2320_v20, 0.0  ;;  %v2505_v32 = vrot.slane %v30_v44, %v5740_v15  ;;  %v2513_v21 = vrot.slane %v30_v44, %v5741_v30 }
 0xa2e   :  { %p3263_p3 = por %p3262_p2, %p3261_p1 }
 0xa2f   :  { %v2324_v58 = vmax.f32 %v2312_v27, 0.0  ;;  %v2344_v14 = vpack.c.bf16 %v2326_v16, %v2325_v17 }
 0xa30   :  { %p3264_p4 = pnand %p3263_p3, %p3257_p0 }
 0xa31   :  { %v2343_v49 = vpack.c.bf16 %v2324_v58, %v2323_v31 }
 0xa33   :  { %3136 = vmatprep.mubr.bf16.mxu0 %v2343_v49 }
 0xa34   :  { %3137 = vmatmul.mubr.bf16.vlgmr.msra.gmra.mxu0 %v2344_v14 }
 0xaf4   :  { %v3138_v46 = vpop.f32.mrf.mxu0 }
 0xaf5   :  { %v2440_v26 = vadd.f32 %v3138_v46, %v2348_v37 }
 0xaf6   :  { %v2431_v24 = vpop.f32.mrf.mxu0 }
 0xaf7   :  { %v2432_v23 = vadd.f32 %v2431_v24, %v2348_v37  ;;  %v2448_v40 = vadd.f32 %v2440_v26, %v2228_v29 }
 0xaf8   :  { %v3139_v36 = vpop.f32.mrf.mxu0 }
 0xaf9   :  { %v2446_v53 = vadd.f32 %v2432_v23, %v2226_v3  ;;  %v2443_v56 = vadd.f32 %v3139_v36, %v2348_v37  ;;  %v2456_v28 = vsel %vm5734_vm12, %v2448_v40, 0.0 }
 0xafa   :  { %v2434_v18 = vpop.f32.mrf.mxu0 }
 0xafb   :  { %v2435_v41 = vadd.f32 %v2434_v18, %v2348_v37  ;;  %v2450_v13 = vsel %vm5732_vm6, %v2446_v53, 0.0  ;;  %v2449_v60 = vadd.f32 %v2443_v56, %v2229_v0 }
 0xafc   :  { %2451 = vadd.xlane.f32.xlu1 %v2450_v13 }
 0xafd   :  { %v2447_v1 = vadd.f32 %v2435_v41, %v2227_v25  ;;  %v2459_v2 = vsel %vm5735_vm13, %v2449_v60, 0.0 }
 0xaff   :  { %v2453_v11 = vsel %vm5733_vm14, %v2447_v1, 0.0 }
 0xb00   :  { %2454 = vadd.xlane.f32.xlu0 %v2453_v11  ;;  %2457 = vadd.xlane.f32.xlu1 %v2456_v28 }
 0xb04   :  { %2460 = vadd.xlane.f32.xlu0 %v2459_v2 }
 0xb85   :  { %v2452_v39 = vpop.xlane.xlu1 %2451 }
 0xb86   :  { %v2462_v12 = vmul.f32 0.015625, %v2452_v39 }
 0xb88   :  { %v2466_v51 = vsub.f32 %v2446_v53, %v2462_v12 }
 0xb89   :  { %v2455_v45 = vpop.xlane.xlu0 %2454  ;;  %v2458_v57 = vpop.xlane.xlu1 %2457 }
 0xb8a   :  { %v2463_v47 = vmul.f32 0.015625, %v2455_v45  ;;  %v2464_v35 = vmul.f32 0.015625, %v2458_v57  ;;  %v2470_v10 = vmul.f32 %v2466_v51, %v2466_v51 }
 0xb8c   :  { %v2467_v63 = vsub.f32 %v2447_v1, %v2463_v47  ;;  %v2468_v34 = vsub.f32 %v2448_v40, %v2464_v35  ;;  %v2474_v9 = vsel %vm5736_vm1, %v2470_v10, 0.0 }
 0xb8d   :  { %v2461_v62 = vpop.xlane.xlu0 %2460  ;;  %2475 = vadd.xlane.f32.xlu1 %v2474_v9 }
 0xb8e   :  { %v2465_v33 = vmul.f32 0.015625, %v2461_v62  ;;  %v2471_v7 = vmul.f32 %v2467_v63, %v2467_v63  ;;  %v2472_v19 = vmul.f32 %v2468_v34, %v2468_v34 }
 0xb90   :  { %v2469_v61 = vsub.f32 %v2449_v60, %v2465_v33  ;;  %v2477_v48 = vsel %vm5737_vm3, %v2471_v7, 0.0  ;;  %v2480_v50 = vsel %vm5738_vm4, %v2472_v19, 0.0 }
 0xb91   :  { %2478 = vadd.xlane.f32.xlu0 %v2477_v48  ;;  %2481 = vadd.xlane.f32.xlu1 %v2480_v50 }
 0xb92   :  { %v2473_v3 = vmul.f32 %v2469_v61, %v2469_v61 }
 0xb94   :  { %v2483_v25 = vsel %vm5739_vm15, %v2473_v3, 0.0 }
 0xb95   :  { %2484 = vadd.xlane.f32.xlu0 %v2483_v25 }
 0xc16   :  { %v2476_v55 = vpop.xlane.xlu1 %2475 }
 0xc17   :  { %v2486_v6 = vmul.f32 0.015625, %v2476_v55 }
 0xc19   :  { %v2490_v43 = vadd.f32 1e-05, %v2486_v6 }
 0xc1a   :  { %v2479_v29 = vpop.xlane.xlu0 %2478  ;;  %v2482_v0 = vpop.xlane.xlu1 %2481 }
 0xc1b   :  { %3247 = vrsqrt.f32 %v2490_v43  ;;  %v2487_v4 = vmul.f32 0.015625, %v2479_v29  ;;  %v2488_v54 = vmul.f32 0.015625, %v2482_v0 }
 0xc1d   :  { %v2491_v59 = vadd.f32 1e-05, %v2487_v4  ;;  %v2492_v42 = vadd.f32 1e-05, %v2488_v54 }
 0xc1e   :  { %v2485_v8 = vpop.xlane.xlu0 %2484 }
 0xc1f   :  { %3249 = vrsqrt.f32 %v2491_v59  ;;  %v2489_v52 = vmul.f32 0.015625, %v2485_v8 }
 0xc20   :  { %3251 = vrsqrt.f32 %v2492_v42 }
 0xc21   :  { %v2493_v38 = vadd.f32 1e-05, %v2489_v52 }
 0xc23   :  { %3253 = vrsqrt.f32 %v2493_v38 }
 0xc28   :  { %v3248_v20 = vpop.eup %3247 }
 0xc29   :  { %v2498_v27 = vmul.f32 %v3248_v20, %v2466_v51 }
 0xc2b   :  { %v2506_v16 = vmul.f32 %v2505_v32, %v2498_v27 }
 0xc2c   :  { %v3250_v31 = vpop.eup %3249 }
 0xc2d   :  { %v3252_v58 = vpop.eup %3251  ;;  %v2499_v17 = vmul.f32 %v3250_v31, %v2467_v63  ;;  %v2514_v49 = vadd.f32 %v2513_v21, %v2506_v16 }
 0xc2e   :  { %v2500_v14 = vmul.f32 %v3252_v58, %v2468_v34 }
 0xc2f   :  { %v2507_v22 = vmul.f32 %v2505_v32, %v2499_v17  ;;  %2518 = vst.msk [vmem:[#allocation2] sm:$0xff] %vm5742_vm2, %v2514_v49 }
 0xc30   :  { %v3254_v37 = vpop.eup %3253  ;;  %v2508_v46 = vmul.f32 %v2505_v32, %v2500_v14 }
 0xc31   :  { %v2501_v24 = vmul.f32 %v3254_v37, %v2469_v61  ;;  %v2515_v26 = vadd.f32 %v2513_v21, %v2507_v22 }
 0xc32   :  { %v2516_v23 = vadd.f32 %v2513_v21, %v2508_v46 }
 0xc33   :  { %v2509_v36 = vmul.f32 %v2505_v32, %v2501_v24  ;;  %2519 = vst.msk [vmem:[#allocation2 + $0x8] sm:$0xff] %vm5743_vm10, %v2515_v26 }
 0xc34   :  { %2520 = vst.msk [vmem:[#allocation2 + $0x10] sm:$0xff] %vm5744_vm9, %v2516_v23 }
 0xc35   :  { %v2517_v5 = vadd.f32 %v2513_v21, %v2509_v36 }
 0xc37   :  { %2521 = vst.msk [vmem:[#allocation2 + $0x18] sm:$0xff] %vm5745_vm5, %v2517_v5 }
 0xc38   :  { %3267 = shalt.err (!%p3264_p4)
}
 0xc39   :  { %s3283_s10 = smov 128   ;;  %s3284_s11 = smov 8  }
 0xc3a   :  { %2533 = dma.vmem_to_hbm [thread:$0]  %s2528_s1, 512, %s5142_s7, [#allocation3], %s3283_s10, %s3283_s10, %s3284_s11  }
 0xc3b   :  { %3276 = dma.done.wait [#allocation3], 512  }
 0xc3c   :  { %3277 = vsyncadd [#allocation3], 4294966784 }
 0xc3d   :  { %2537 = vsyncpa [#allocation3], 1 }

</bundles_post_ra>
